<compile_context>
chip_gen: v7x
topology: tpu7x:2x2x1
jax: 0.10.0
libtpu: 0.0.40
codegen_flags: <defaults>
</compile_context>

<pallas_src>
import math
from functools import partial

import jax
import jax.numpy as jnp
from jax import lax
from jax.experimental import pallas as pl
from jax.experimental.pallas import tpu as pltpu

EPS = 1e-5  # PyTorch nn.LayerNorm default eps


def _layernorm(x, g, b):
    mu = jnp.mean(x, axis=-1, keepdims=True)
    var = jnp.mean((x - mu) ** 2, axis=-1, keepdims=True)
    return (x - mu) * lax.rsqrt(var + EPS) * g + b


def _gelu_exact(x):
    # PyTorch nn.GELU() default is the exact erf-based formulation
    return 0.5 * x * (1.0 + lax.erf(x * (1.0 / math.sqrt(2.0))))


# --------------------------- fused per-layer kernel ---------------------------
def make_layer_kernel(heads, dim_head, compute_dtype):
    inner = heads * dim_head

    def kernel(x_ref, ln1g_ref, ln1b_ref, wq_ref, wk_ref, wv_ref, wo_ref, bo_ref,
               ln2g_ref, ln2b_ref, w1_ref, b1_ref, w2_ref, b2_ref, o_ref):
        Bt, N, D = x_ref.shape
        M = Bt * N
        # Fold the batch tile into the matmul M dimension.
        x = x_ref[...].astype(jnp.float32).reshape(M, D)

        # ---------------- PreNorm + Attention ----------------
        xn = _layernorm(x, ln1g_ref[...], ln1b_ref[...])                 # f32
        xnc = xn.astype(compute_dtype)
        xh = jnp.broadcast_to(xnc[None], (heads, M, D))                  # head-major batch (hoisted once)

        # Per-head q/k/v as batched matmuls: contraction K = D, no lane slicing, no transposes.
        # (1/sqrt(dim_head) is already folded into wq at parameter-prep time.)
        q = jnp.einsum('hmd,hdk->hmk', xh, wq_ref[...], preferred_element_type=jnp.float32)
        k = jnp.einsum('hmd,hdk->hmk', xh, wk_ref[...], preferred_element_type=jnp.float32)
        v = jnp.einsum('hmd,hdk->hmk', xh, wv_ref[...], preferred_element_type=jnp.float32)

        z = heads * Bt
        qz = q.astype(compute_dtype).reshape(z, N, dim_head)
        kz = k.astype(compute_dtype).reshape(z, N, dim_head)
        vz = v.astype(compute_dtype).reshape(z, N, dim_head)

        # Q·K^T contracting the LAST dims of both operands (MXU-native, no K transpose).
        dots = jnp.einsum('znd,zmd->znm', qz, kz, preferred_element_type=jnp.float32)
        dots = dots - jnp.max(dots, axis=-1, keepdims=True)
        e = jnp.exp(dots)
        probs = e * pl.reciprocal(jnp.sum(e, axis=-1, keepdims=True), approx=True)

        av = jnp.einsum('znm,zmd->znd', probs.astype(compute_dtype), vz,
                        preferred_element_type=jnp.float32)              # (z, N, dh) f32
        av = av.reshape(heads, M, dim_head)

        # Fused head-concat + output projection: one (M, inner) @ (inner, D) matmul, K = inner.
        o_cat = jnp.concatenate([av[h] for h in range(heads)], axis=-1)  # (M, inner)
        attn_out = jnp.dot(o_cat.astype(compute_dtype), wo_ref[...],
                           preferred_element_type=jnp.float32) + bo_ref[...]
        x = x + attn_out                                                 # residual 1 (f32)

        # ---------------- PreNorm + FeedForward ----------------
        xn2 = _layernorm(x, ln2g_ref[...], ln2b_ref[...])
        h1 = jnp.dot(xn2.astype(compute_dtype), w1_ref[...],
                     preferred_element_type=jnp.float32) + b1_ref[...]
        h1 = _gelu_exact(h1)                                             # exact erf GELU, f32
        y = jnp.dot(h1.astype(compute_dtype), w2_ref[...],
                    preferred_element_type=jnp.float32) + b2_ref[...]
        y = y + x                                                        # residual 2 (f32)

        o_ref[...] = y.reshape(Bt, N, D).astype(o_ref.dtype)

    return kernel


# --------------------------- wrapper-side parameter prep (one-time) ---------------------------
def prepare_layer_params(params, heads, dim_head, compute_dtype):
    ln1g, ln1b, wqkv, wo, bo, ln2g, ln2b, w1, b1, w2, b2 = params
    D = wqkv.shape[0]
    inner = heads * dim_head
    scale = dim_head ** (-0.5)
    f32 = jnp.float32

    def head_major(w):   # (D, inner) -> (heads, D, dim_head)
        return w.reshape(D, heads, dim_head).transpose(1, 0, 2)

    wq = (head_major(wqkv[:, 0 * inner:1 * inner]) * scale).astype(compute_dtype)  # scale folded into Q
    wk = head_major(wqkv[:, 1 * inner:2 * inner]).astype(compute_dtype)
    wv = head_major(wqkv[:, 2 * inner:3 * inner]).astype(compute_dtype)

    return (ln1g.reshape(1, D).astype(f32), ln1b.reshape(1, D).astype(f32),
            wq, wk, wv,
            wo.astype(compute_dtype), bo.reshape(1, D).astype(f32),
            ln2g.reshape(1, D).astype(f32), ln2b.reshape(1, D).astype(f32),
            w1.astype(compute_dtype), b1.reshape(1, -1).astype(f32),
            w2.astype(compute_dtype), b2.reshape(1, D).astype(f32))


def transformer_layer_pallas(x, prepared, heads, dim_head, compute_dtype, batch_tile):
    B, N, D = x.shape
    bt = min(batch_tile, B)
    while B % bt:                # largest divisor of B not exceeding batch_tile
        bt -= 1
    assert N % 8 == 0, "token count must be a multiple of 8 (sublane alignment)"
    # TODO(synk): for N not a multiple of 8 (e.g. ViT N=197) pad tokens to 200/208 with masked softmax rows.
    # TODO(synk): for D < 128 (toy configs) pad D to a lane multiple so stores are unmasked vst.

    kernel = make_layer_kernel(heads, dim_head, compute_dtype)

    def wspec(arr):
        nd = arr.ndim
        return pl.BlockSpec(arr.shape, lambda b, _nd=nd: (0,) * _nd)

    return pl.pallas_call(
        kernel,
        out_shape=jax.ShapeDtypeStruct((B, N, D), x.dtype),
        grid=(B // bt,),
        in_specs=[pl.BlockSpec((bt, N, D), lambda b: (b, 0, 0))]
                 + [wspec(p) for p in prepared],
        out_specs=pl.BlockSpec((bt, N, D), lambda b: (b, 0, 0)),
        input_output_aliases={0: 0},                      # write layer output over its input buffer
        compiler_params=pltpu.CompilerParams(
            dimension_semantics=("parallel",),            # batch grid -> 2-TC split on v7x, no-op elsewhere
            vmem_limit_bytes=64 * 1024 * 1024,            # above the 16/32 MiB scoped defaults, <= v7x physical
        ),
    )(x, *prepared)


@partial(jax.jit, static_argnames=("heads", "dim_head", "compute_dtype", "batch_tile"))
def transformer_pallas(x, layer_params, *, heads, dim_head,
                       compute_dtype=jnp.bfloat16, batch_tile=8):
    for params in layer_params:
        prepared = prepare_layer_params(params, heads, dim_head, compute_dtype)
        x = transformer_layer_pallas(x, prepared, heads, dim_head, compute_dtype, batch_tile)
    return x


# --------------------------- pure-JAX reference ---------------------------
def _ref_block(x, params, heads, dim_head):
    ln1g, ln1b, wqkv, wo, bo, ln2g, ln2b, w1, b1, w2, b2 = params
    B, N, D = x.shape
    inner = heads * dim_head

    def ln(t, g, b):
        mu = t.mean(-1, keepdims=True)
        var = ((t - mu) ** 2).mean(-1, keepdims=True)
        return (t - mu) / jnp.sqrt(var + EPS) * g + b

    xn = ln(x, ln1g, ln1b)
    qkv = xn @ wqkv
    q, k, v = jnp.split(qkv, 3, axis=-1)
    reshape_heads = lambda t: t.reshape(B, N, heads, dim_head).transpose(0, 2, 1, 3)
    q, k, v = map(reshape_heads, (q, k, v))
    dots = jnp.einsum('bhid,bhjd->bhij', q, k) * dim_head ** (-0.5)
    attn = jax.nn.softmax(dots, axis=-1)
    out = jnp.einsum('bhij,bhjd->bhid', attn, v)
    out = out.transpose(0, 2, 1, 3).reshape(B, N, inner)
    x = out @ wo + bo + x
    xn2 = ln(x, ln2g, ln2b)
    h1 = xn2 @ w1 + b1
    h1 = 0.5 * h1 * (1.0 + jax.scipy.special.erf(h1 / jnp.sqrt(2.0)))
    return h1 @ w2 + b2 + x


def transformer_ref(x, layer_params, heads, dim_head):
    for params in layer_params:
        x = _ref_block(x, params, heads, dim_head)
    return x


# --------------------------- parameter construction ---------------------------
def init_layer_params(key, dim, heads, dim_head, mlp_dim):
    inner = heads * dim_head
    ks = jax.random.split(key, 6)
    s = 0.02
    ln1g = jnp.ones((1, dim), jnp.float32)
    ln1b = jnp.zeros((1, dim), jnp.float32)
    wqkv = s * jax.random.normal(ks[0], (dim, inner * 3), jnp.float32)
    wo = s * jax.random.normal(ks[1], (inner, dim), jnp.float32)
    bo = s * jax.random.normal(ks[2], (1, dim), jnp.float32)
    ln2g = jnp.ones((1, dim), jnp.float32)
    ln2b = jnp.zeros((1, dim), jnp.float32)
    w1 = s * jax.random.normal(ks[3], (dim, mlp_dim), jnp.float32)
    b1 = s * jax.random.normal(ks[4], (1, mlp_dim), jnp.float32)
    w2 = s * jax.random.normal(ks[5], (mlp_dim, dim), jnp.float32)
    b2 = jnp.zeros((1, dim), jnp.float32)
    return (ln1g, ln1b, wqkv, wo, bo, ln2g, ln2b, w1, b1, w2, b2)


if __name__ == "__main__":
    # Small shapes consistent with the module's forward: x is (batch, seq, dim)
    B, N, dim = 2, 8, 32
    depth, heads, dim_head, mlp_dim = 2, 4, 8, 64
    # dropout=0.0, drop_path=0.0 -> Dropout / DropPath are identities (inference semantics)

    key = jax.random.PRNGKey(0)
    kx, kp = jax.random.split(key)
    x = jax.random.normal(kx, (B, N, dim), jnp.float32)

    layer_keys = jax.random.split(kp, depth)
    layer_params = [init_layer_params(layer_keys[i], dim, heads, dim_head, mlp_dim)
                    for i in range(depth)]

    ref = transformer_ref(x, layer_params, heads, dim_head)

    # f32 compute path: tight structural check of the rewritten attention / fused projection.
    out_f32 = jax.block_until_ready(
        transformer_pallas(x, layer_params, heads=heads, dim_head=dim_head,
                           compute_dtype=jnp.float32))
    assert out_f32.shape == (B, N, dim)
    assert jnp.allclose(out_f32, ref, rtol=2e-3, atol=2e-3), "f32 kernel mismatch vs reference"

    # bf16 MXU path (weights + matmul operands in bf16; LN / softmax / residuals stay f32).
    out_bf16 = jax.block_until_ready(
        transformer_pallas(x, layer_params, heads=heads, dim_head=dim_head,
                           compute_dtype=jnp.bfloat16))
    assert out_bf16.shape == (B, N, dim)
    assert jnp.allclose(out_bf16, ref, rtol=3e-2, atol=3e-2), "bf16 kernel mismatch vs reference"

    print("KERNEL_OK")
</pallas_src>

<mosaic_0001>
module attributes {stable_mosaic.version = 11 : i64} {
  func.func @kernel(%arg0: i32, %arg1: memref<2x8x32xf32, #tpu.memory_space<vmem>>, %arg2: memref<1x32xf32, #tpu.memory_space<vmem>>, %arg3: memref<1x32xf32, #tpu.memory_space<vmem>>, %arg4: memref<4x32x8xf32, #tpu.memory_space<vmem>>, %arg5: memref<4x32x8xf32, #tpu.memory_space<vmem>>, %arg6: memref<4x32x8xf32, #tpu.memory_space<vmem>>, %arg7: memref<32x32xf32, #tpu.memory_space<vmem>>, %arg8: memref<1x32xf32, #tpu.memory_space<vmem>>, %arg9: memref<1x32xf32, #tpu.memory_space<vmem>>, %arg10: memref<1x32xf32, #tpu.memory_space<vmem>>, %arg11: memref<32x64xf32, #tpu.memory_space<vmem>>, %arg12: memref<1x64xf32, #tpu.memory_space<vmem>>, %arg13: memref<64x32xf32, #tpu.memory_space<vmem>>, %arg14: memref<1x32xf32, #tpu.memory_space<vmem>>, %arg15: memref<2x8x32xf32, #tpu.memory_space<vmem>>) attributes {dimension_semantics = [#tpu.dimension_semantics<parallel>], iteration_bounds = array<i64: 1>, scalar_prefetch = 0 : i64, scratch_operands = 0 : i64, tpu.core_type = #tpu.core_type<tc>, window_params = [{transform_indices = @transform_0, window_bounds = array<i64: 2, 8, 32>}, {pipeline_mode = #tpu.pipeline_mode<synchronous>, transform_indices = @transform_1, window_bounds = array<i64: 1, 32>}, {pipeline_mode = #tpu.pipeline_mode<synchronous>, transform_indices = @transform_2, window_bounds = array<i64: 1, 32>}, {pipeline_mode = #tpu.pipeline_mode<synchronous>, transform_indices = @transform_3, window_bounds = array<i64: 4, 32, 8>}, {pipeline_mode = #tpu.pipeline_mode<synchronous>, transform_indices = @transform_4, window_bounds = array<i64: 4, 32, 8>}, {pipeline_mode = #tpu.pipeline_mode<synchronous>, transform_indices = @transform_5, window_bounds = array<i64: 4, 32, 8>}, {pipeline_mode = #tpu.pipeline_mode<synchronous>, transform_indices = @transform_6, window_bounds = array<i64: 32, 32>}, {pipeline_mode = #tpu.pipeline_mode<synchronous>, transform_indices = @transform_7, window_bounds = array<i64: 1, 32>}, {pipeline_mode = #tpu.pipeline_mode<synchronous>, transform_indices = @transform_8, window_bounds = array<i64: 1, 32>}, {pipeline_mode = #tpu.pipeline_mode<synchronous>, transform_indices = @transform_9, window_bounds = array<i64: 1, 32>}, {pipeline_mode = #tpu.pipeline_mode<synchronous>, transform_indices = @transform_10, window_bounds = array<i64: 32, 64>}, {pipeline_mode = #tpu.pipeline_mode<synchronous>, transform_indices = @transform_11, window_bounds = array<i64: 1, 64>}, {pipeline_mode = #tpu.pipeline_mode<synchronous>, transform_indices = @transform_12, window_bounds = array<i64: 64, 32>}, {pipeline_mode = #tpu.pipeline_mode<synchronous>, transform_indices = @transform_13, window_bounds = array<i64: 1, 32>}, {transform_indices = @transform_14, window_bounds = array<i64: 2, 8, 32>}]} {
    %c0 = arith.constant 0 : index
    %c0_0 = arith.constant 0 : index
    %c0_1 = arith.constant 0 : index
    %0 = vector.load %arg1[%c0, %c0_0, %c0_1] : memref<2x8x32xf32, #tpu.memory_space<vmem>>, vector<2x8x32xf32>
    %1 = vector.shape_cast %0 : vector<2x8x32xf32> to vector<16x32xf32>
    %c0_2 = arith.constant 0 : index
    %c0_3 = arith.constant 0 : index
    %2 = vector.load %arg2[%c0_2, %c0_3] : memref<1x32xf32, #tpu.memory_space<vmem>>, vector<1x32xf32>
    %c0_4 = arith.constant 0 : index
    %c0_5 = arith.constant 0 : index
    %3 = vector.load %arg3[%c0_4, %c0_5] : memref<1x32xf32, #tpu.memory_space<vmem>>, vector<1x32xf32>
    %cst = arith.constant dense<0.000000e+00> : vector<16xf32>
    %4 = vector.multi_reduction <add>, %1, %cst [1] : vector<16x32xf32> to vector<16xf32>
    %5 = vector.shape_cast %4 : vector<16xf32> to vector<16x1xf32>
    %cst_6 = arith.constant 3.200000e+01 : f32
    %6 = vector.broadcast %cst_6 : f32 to vector<16x1xf32>
    %7 = arith.divf %5, %6 : vector<16x1xf32>
    %8 = vector.broadcast %7 : vector<16x1xf32> to vector<16x32xf32>
    %9 = arith.subf %1, %8 : vector<16x32xf32>
    %10 = arith.mulf %9, %9 : vector<16x32xf32>
    %cst_7 = arith.constant dense<0.000000e+00> : vector<16xf32>
    %11 = vector.multi_reduction <add>, %10, %cst_7 [1] : vector<16x32xf32> to vector<16xf32>
    %12 = vector.shape_cast %11 : vector<16xf32> to vector<16x1xf32>
    %cst_8 = arith.constant 3.200000e+01 : f32
    %13 = vector.broadcast %cst_8 : f32 to vector<16x1xf32>
    %14 = arith.divf %12, %13 : vector<16x1xf32>
    %15 = vector.broadcast %7 : vector<16x1xf32> to vector<16x32xf32>
    %16 = arith.subf %1, %15 : vector<16x32xf32>
    %cst_9 = arith.constant 9.99999974E-6 : f32
    %17 = vector.broadcast %cst_9 : f32 to vector<16x1xf32>
    %18 = arith.addf %14, %17 : vector<16x1xf32>
    %19 = math.rsqrt %18 : vector<16x1xf32>
    %20 = vector.broadcast %19 : vector<16x1xf32> to vector<16x32xf32>
    %21 = arith.mulf %16, %20 : vector<16x32xf32>
    %22 = vector.broadcast %2 : vector<1x32xf32> to vector<16x32xf32>
    %23 = arith.mulf %21, %22 : vector<16x32xf32>
    %24 = vector.broadcast %3 : vector<1x32xf32> to vector<16x32xf32>
    %25 = arith.addf %23, %24 : vector<16x32xf32>
    %26 = vector.shape_cast %25 : vector<16x32xf32> to vector<1x16x32xf32>
    %27 = vector.shape_cast %26 : vector<1x16x32xf32> to vector<1x16x32xf32>
    %28 = vector.broadcast %27 : vector<1x16x32xf32> to vector<4x16x32xf32>
    %c0_10 = arith.constant 0 : index
    %c0_11 = arith.constant 0 : index
    %c0_12 = arith.constant 0 : index
    %29 = vector.load %arg4[%c0_10, %c0_11, %c0_12] : memref<4x32x8xf32, #tpu.memory_space<vmem>>, vector<4x32x8xf32>
    "tpu.trace_start"() <{level = 10 : i32, message = "hmd,hdk->hmk"}> : () -> ()
    %cst_13 = arith.constant dense<0.000000e+00> : vector<4x16x8xf32>
    %30 = tpu.matmul %28, %29, %cst_13 {dimension_numbers = #tpu.dot_dimension_numbers<[2], [1], [1], [2], [0, 0, 0, 1, 1, 2], [0], [0]>} : vector<4x16x32xf32>, vector<4x32x8xf32>, vector<4x16x8xf32> -> vector<4x16x8xf32>
    "tpu.trace_stop"() : () -> ()
    %c0_14 = arith.constant 0 : index
    %c0_15 = arith.constant 0 : index
    %c0_16 = arith.constant 0 : index
    %31 = vector.load %arg5[%c0_14, %c0_15, %c0_16] : memref<4x32x8xf32, #tpu.memory_space<vmem>>, vector<4x32x8xf32>
    "tpu.trace_start"() <{level = 10 : i32, message = "hmd,hdk->hmk"}> : () -> ()
    %cst_17 = arith.constant dense<0.000000e+00> : vector<4x16x8xf32>
    %32 = tpu.matmul %28, %31, %cst_17 {dimension_numbers = #tpu.dot_dimension_numbers<[2], [1], [1], [2], [0, 0, 0, 1, 1, 2], [0], [0]>} : vector<4x16x32xf32>, vector<4x32x8xf32>, vector<4x16x8xf32> -> vector<4x16x8xf32>
    "tpu.trace_stop"() : () -> ()
    %c0_18 = arith.constant 0 : index
    %c0_19 = arith.constant 0 : index
    %c0_20 = arith.constant 0 : index
    %33 = vector.load %arg6[%c0_18, %c0_19, %c0_20] : memref<4x32x8xf32, #tpu.memory_space<vmem>>, vector<4x32x8xf32>
    "tpu.trace_start"() <{level = 10 : i32, message = "hmd,hdk->hmk"}> : () -> ()
    %cst_21 = arith.constant dense<0.000000e+00> : vector<4x16x8xf32>
    %34 = tpu.matmul %28, %33, %cst_21 {dimension_numbers = #tpu.dot_dimension_numbers<[2], [1], [1], [2], [0, 0, 0, 1, 1, 2], [0], [0]>} : vector<4x16x32xf32>, vector<4x32x8xf32>, vector<4x16x8xf32> -> vector<4x16x8xf32>
    "tpu.trace_stop"() : () -> ()
    %35 = vector.shape_cast %30 : vector<4x16x8xf32> to vector<8x8x8xf32>
    %36 = vector.shape_cast %32 : vector<4x16x8xf32> to vector<8x8x8xf32>
    %37 = vector.shape_cast %34 : vector<4x16x8xf32> to vector<8x8x8xf32>
    "tpu.trace_start"() <{level = 10 : i32, message = "znd,zmd->znm"}> : () -> ()
    %cst_22 = arith.constant dense<0.000000e+00> : vector<8x8x8xf32>
    %38 = tpu.matmul %35, %36, %cst_22 {dimension_numbers = #tpu.dot_dimension_numbers<[2], [2], [1], [1], [0, 0, 0, 1, 1, 1], [0], [0]>} : vector<8x8x8xf32>, vector<8x8x8xf32>, vector<8x8x8xf32> -> vector<8x8x8xf32>
    "tpu.trace_stop"() : () -> ()
    %cst_23 = arith.constant dense<0xFF800000> : vector<8x8xf32>
    %39 = vector.multi_reduction <maximumf>, %38, %cst_23 [2] : vector<8x8x8xf32> to vector<8x8xf32>
    %40 = vector.shape_cast %39 : vector<8x8xf32> to vector<8x8x1xf32>
    %41 = vector.broadcast %40 : vector<8x8x1xf32> to vector<8x8x8xf32>
    %42 = arith.subf %38, %41 : vector<8x8x8xf32>
    %43 = math.exp %42 : vector<8x8x8xf32>
    %cst_24 = arith.constant dense<0.000000e+00> : vector<8x8xf32>
    %44 = vector.multi_reduction <add>, %43, %cst_24 [2] : vector<8x8x8xf32> to vector<8x8xf32>
    %45 = vector.shape_cast %44 : vector<8x8xf32> to vector<8x8x1xf32>
    %46 = tpu.reciprocal %45 {approx = true} : vector<8x8x1xf32> -> vector<8x8x1xf32>
    %47 = vector.broadcast %46 : vector<8x8x1xf32> to vector<8x8x8xf32>
    %48 = arith.mulf %43, %47 : vector<8x8x8xf32>
    "tpu.trace_start"() <{level = 10 : i32, message = "znm,zmd->znd"}> : () -> ()
    %cst_25 = arith.constant dense<0.000000e+00> : vector<8x8x8xf32>
    %49 = tpu.matmul %48, %37, %cst_25 {dimension_numbers = #tpu.dot_dimension_numbers<[2], [1], [1], [2], [0, 0, 0, 1, 1, 2], [0], [0]>} : vector<8x8x8xf32>, vector<8x8x8xf32>, vector<8x8x8xf32> -> vector<8x8x8xf32>
    "tpu.trace_stop"() : () -> ()
    %50 = vector.shape_cast %49 : vector<8x8x8xf32> to vector<4x16x8xf32>
    %51 = vector.extract_strided_slice %50 {offsets = [0, 0, 0], sizes = [1, 16, 8], strides = [1, 1, 1]} : vector<4x16x8xf32> to vector<1x16x8xf32>
    %52 = vector.shape_cast %51 : vector<1x16x8xf32> to vector<16x8xf32>
    %53 = vector.extract_strided_slice %50 {offsets = [1, 0, 0], sizes = [1, 16, 8], strides = [1, 1, 1]} : vector<4x16x8xf32> to vector<1x16x8xf32>
    %54 = vector.shape_cast %53 : vector<1x16x8xf32> to vector<16x8xf32>
    %55 = vector.extract_strided_slice %50 {offsets = [2, 0, 0], sizes = [1, 16, 8], strides = [1, 1, 1]} : vector<4x16x8xf32> to vector<1x16x8xf32>
    %56 = vector.shape_cast %55 : vector<1x16x8xf32> to vector<16x8xf32>
    %57 = vector.extract_strided_slice %50 {offsets = [3, 0, 0], sizes = [1, 16, 8], strides = [1, 1, 1]} : vector<4x16x8xf32> to vector<1x16x8xf32>
    %58 = vector.shape_cast %57 : vector<1x16x8xf32> to vector<16x8xf32>
    %59 = tpu.concatenate %52, %54, %56, %58 in 1 : vector<16x8xf32>, vector<16x8xf32>, vector<16x8xf32>, vector<16x8xf32> -> vector<16x32xf32>
    %c0_26 = arith.constant 0 : index
    %c0_27 = arith.constant 0 : index
    %60 = vector.load %arg7[%c0_26, %c0_27] : memref<32x32xf32, #tpu.memory_space<vmem>>, vector<32x32xf32>
    %cst_28 = arith.constant dense<0.000000e+00> : vector<16x32xf32>
    %61 = tpu.matmul %59, %60, %cst_28 {dimension_numbers = #tpu.dot_dimension_numbers<[1], [0], [0], [1], [0, 0, 1, 1], [], []>} : vector<16x32xf32>, vector<32x32xf32>, vector<16x32xf32> -> vector<16x32xf32>
    %c0_29 = arith.constant 0 : index
    %c0_30 = arith.constant 0 : index
    %62 = vector.load %arg8[%c0_29, %c0_30] : memref<1x32xf32, #tpu.memory_space<vmem>>, vector<1x32xf32>
    %63 = vector.broadcast %62 : vector<1x32xf32> to vector<16x32xf32>
    %64 = arith.addf %61, %63 : vector<16x32xf32>
    %65 = arith.addf %1, %64 : vector<16x32xf32>
    %c0_31 = arith.constant 0 : index
    %c0_32 = arith.constant 0 : index
    %66 = vector.load %arg9[%c0_31, %c0_32] : memref<1x32xf32, #tpu.memory_space<vmem>>, vector<1x32xf32>
    %c0_33 = arith.constant 0 : index
    %c0_34 = arith.constant 0 : index
    %67 = vector.load %arg10[%c0_33, %c0_34] : memref<1x32xf32, #tpu.memory_space<vmem>>, vector<1x32xf32>
    %cst_35 = arith.constant dense<0.000000e+00> : vector<16xf32>
    %68 = vector.multi_reduction <add>, %65, %cst_35 [1] : vector<16x32xf32> to vector<16xf32>
    %69 = vector.shape_cast %68 : vector<16xf32> to vector<16x1xf32>
    %cst_36 = arith.constant 3.200000e+01 : f32
    %70 = vector.broadcast %cst_36 : f32 to vector<16x1xf32>
    %71 = arith.divf %69, %70 : vector<16x1xf32>
    %72 = vector.broadcast %71 : vector<16x1xf32> to vector<16x32xf32>
    %73 = arith.subf %65, %72 : vector<16x32xf32>
    %74 = arith.mulf %73, %73 : vector<16x32xf32>
    %cst_37 = arith.constant dense<0.000000e+00> : vector<16xf32>
    %75 = vector.multi_reduction <add>, %74, %cst_37 [1] : vector<16x32xf32> to vector<16xf32>
    %76 = vector.shape_cast %75 : vector<16xf32> to vector<16x1xf32>
    %cst_38 = arith.constant 3.200000e+01 : f32
    %77 = vector.broadcast %cst_38 : f32 to vector<16x1xf32>
    %78 = arith.divf %76, %77 : vector<16x1xf32>
    %79 = vector.broadcast %71 : vector<16x1xf32> to vector<16x32xf32>
    %80 = arith.subf %65, %79 : vector<16x32xf32>
    %cst_39 = arith.constant 9.99999974E-6 : f32
    %81 = vector.broadcast %cst_39 : f32 to vector<16x1xf32>
    %82 = arith.addf %78, %81 : vector<16x1xf32>
    %83 = math.rsqrt %82 : vector<16x1xf32>
    %84 = vector.broadcast %83 : vector<16x1xf32> to vector<16x32xf32>
    %85 = arith.mulf %80, %84 : vector<16x32xf32>
    %86 = vector.broadcast %66 : vector<1x32xf32> to vector<16x32xf32>
    %87 = arith.mulf %85, %86 : vector<16x32xf32>
    %88 = vector.broadcast %67 : vector<1x32xf32> to vector<16x32xf32>
    %89 = arith.addf %87, %88 : vector<16x32xf32>
    %c0_40 = arith.constant 0 : index
    %c0_41 = arith.constant 0 : index
    %90 = vector.load %arg11[%c0_40, %c0_41] : memref<32x64xf32, #tpu.memory_space<vmem>>, vector<32x64xf32>
    %cst_42 = arith.constant dense<0.000000e+00> : vector<16x64xf32>
    %91 = tpu.matmul %89, %90, %cst_42 {dimension_numbers = #tpu.dot_dimension_numbers<[1], [0], [0], [1], [0, 0, 1, 1], [], []>} : vector<16x32xf32>, vector<32x64xf32>, vector<16x64xf32> -> vector<16x64xf32>
    %c0_43 = arith.constant 0 : index
    %c0_44 = arith.constant 0 : index
    %92 = vector.load %arg12[%c0_43, %c0_44] : memref<1x64xf32, #tpu.memory_space<vmem>>, vector<1x64xf32>
    %93 = vector.broadcast %92 : vector<1x64xf32> to vector<16x64xf32>
    %94 = arith.addf %91, %93 : vector<16x64xf32>
    %cst_45 = arith.constant 5.000000e-01 : f32
    %95 = vector.broadcast %cst_45 : f32 to vector<16x64xf32>
    %96 = arith.mulf %95, %94 : vector<16x64xf32>
    %cst_46 = arith.constant 0.707106769 : f32
    %97 = vector.broadcast %cst_46 : f32 to vector<16x64xf32>
    %98 = arith.mulf %94, %97 : vector<16x64xf32>
    %99 = math.erf %98 : vector<16x64xf32>
    %cst_47 = arith.constant 1.000000e+00 : f32
    %100 = vector.broadcast %cst_47 : f32 to vector<16x64xf32>
    %101 = arith.addf %100, %99 : vector<16x64xf32>
    %102 = arith.mulf %96, %101 : vector<16x64xf32>
    %c0_48 = arith.constant 0 : index
    %c0_49 = arith.constant 0 : index
    %103 = vector.load %arg13[%c0_48, %c0_49] : memref<64x32xf32, #tpu.memory_space<vmem>>, vector<64x32xf32>
    %cst_50 = arith.constant dense<0.000000e+00> : vector<16x32xf32>
    %104 = tpu.matmul %102, %103, %cst_50 {dimension_numbers = #tpu.dot_dimension_numbers<[1], [0], [0], [1], [0, 0, 1, 1], [], []>} : vector<16x64xf32>, vector<64x32xf32>, vector<16x32xf32> -> vector<16x32xf32>
    %c0_51 = arith.constant 0 : index
    %c0_52 = arith.constant 0 : index
    %105 = vector.load %arg14[%c0_51, %c0_52] : memref<1x32xf32, #tpu.memory_space<vmem>>, vector<1x32xf32>
    %106 = vector.broadcast %105 : vector<1x32xf32> to vector<16x32xf32>
    %107 = arith.addf %104, %106 : vector<16x32xf32>
    %108 = arith.addf %107, %65 : vector<16x32xf32>
    %109 = vector.shape_cast %108 : vector<16x32xf32> to vector<2x8x32xf32>
    %c0_53 = arith.constant 0 : index
    %c0_54 = arith.constant 0 : index
    %c0_55 = arith.constant 0 : index
    %110 = vector.load %arg15[%c0_53, %c0_54, %c0_55] : memref<2x8x32xf32, #tpu.memory_space<vmem>>, vector<2x8x32xf32>
    tpu.vector_store %arg15[%c0_53, %c0_54, %c0_55], %109 {strides = array<i32>} : memref<2x8x32xf32, #tpu.memory_space<vmem>>, vector<2x8x32xf32>,
    return
  }
  func.func @transform_0(%arg0: i32) -> (i32, i32, i32) {
    %c0_i32 = arith.constant 0 : i32
    %c0_i32_0 = arith.constant 0 : i32
    %c0_i32_1 = arith.constant 0 : i32
    return %arg0, %c0_i32, %c0_i32_0 : i32, i32, i32
  }
  func.func @transform_1(%arg0: i32) -> (i32, i32) {
    %c0_i32 = arith.constant 0 : i32
    %c0_i32_0 = arith.constant 0 : i32
    %c0_i32_1 = arith.constant 0 : i32
    return %c0_i32, %c0_i32_0 : i32, i32
  }
  func.func @transform_2(%arg0: i32) -> (i32, i32) {
    %c0_i32 = arith.constant 0 : i32
    %c0_i32_0 = arith.constant 0 : i32
    %c0_i32_1 = arith.constant 0 : i32
    return %c0_i32, %c0_i32_0 : i32, i32
  }
  func.func @transform_3(%arg0: i32) -> (i32, i32, i32) {
    %c0_i32 = arith.constant 0 : i32
    %c0_i32_0 = arith.constant 0 : i32
    %c0_i32_1 = arith.constant 0 : i32
    %c0_i32_2 = arith.constant 0 : i32
    return %c0_i32, %c0_i32_0, %c0_i32_1 : i32, i32, i32
  }
  func.func @transform_4(%arg0: i32) -> (i32, i32, i32) {
    %c0_i32 = arith.constant 0 : i32
    %c0_i32_0 = arith.constant 0 : i32
    %c0_i32_1 = arith.constant 0 : i32
    %c0_i32_2 = arith.constant 0 : i32
    return %c0_i32, %c0_i32_0, %c0_i32_1 : i32, i32, i32
  }
  func.func @transform_5(%arg0: i32) -> (i32, i32, i32) {
    %c0_i32 = arith.constant 0 : i32
    %c0_i32_0 = arith.constant 0 : i32
    %c0_i32_1 = arith.constant 0 : i32
    %c0_i32_2 = arith.constant 0 : i32
    return %c0_i32, %c0_i32_0, %c0_i32_1 : i32, i32, i32
  }
  func.func @transform_6(%arg0: i32) -> (i32, i32) {
    %c0_i32 = arith.constant 0 : i32
    %c0_i32_0 = arith.constant 0 : i32
    %c0_i32_1 = arith.constant 0 : i32
    return %c0_i32, %c0_i32_0 : i32, i32
  }
  func.func @transform_7(%arg0: i32) -> (i32, i32) {
    %c0_i32 = arith.constant 0 : i32
    %c0_i32_0 = arith.constant 0 : i32
    %c0_i32_1 = arith.constant 0 : i32
    return %c0_i32, %c0_i32_0 : i32, i32
  }
  func.func @transform_8(%arg0: i32) -> (i32, i32) {
    %c0_i32 = arith.constant 0 : i32
    %c0_i32_0 = arith.constant 0 : i32
    %c0_i32_1 = arith.constant 0 : i32
    return %c0_i32, %c0_i32_0 : i32, i32
  }
  func.func @transform_9(%arg0: i32) -> (i32, i32) {
    %c0_i32 = arith.constant 0 : i32
    %c0_i32_0 = arith.constant 0 : i32
    %c0_i32_1 = arith.constant 0 : i32
    return %c0_i32, %c0_i32_0 : i32, i32
  }
  func.func @transform_10(%arg0: i32) -> (i32, i32) {
    %c0_i32 = arith.constant 0 : i32
    %c0_i32_0 = arith.constant 0 : i32
    %c0_i32_1 = arith.constant 0 : i32
    return %c0_i32, %c0_i32_0 : i32, i32
  }
  func.func @transform_11(%arg0: i32) -> (i32, i32) {
    %c0_i32 = arith.constant 0 : i32
    %c0_i32_0 = arith.constant 0 : i32
    %c0_i32_1 = arith.constant 0 : i32
    return %c0_i32, %c0_i32_0 : i32, i32
  }
  func.func @transform_12(%arg0: i32) -> (i32, i32) {
    %c0_i32 = arith.constant 0 : i32
    %c0_i32_0 = arith.constant 0 : i32
    %c0_i32_1 = arith.constant 0 : i32
    return %c0_i32, %c0_i32_0 : i32, i32
  }
  func.func @transform_13(%arg0: i32) -> (i32, i32) {
    %c0_i32 = arith.constant 0 : i32
    %c0_i32_0 = arith.constant 0 : i32
    %c0_i32_1 = arith.constant 0 : i32
    return %c0_i32, %c0_i32_0 : i32, i32
  }
  func.func @transform_14(%arg0: i32) -> (i32, i32, i32) {
    %c0_i32 = arith.constant 0 : i32
    %c0_i32_0 = arith.constant 0 : i32
    %c0_i32_1 = arith.constant 0 : i32
    return %arg0, %c0_i32, %c0_i32_0 : i32, i32, i32
  }
}

</mosaic_0001>

<bundles_post_ra>
// kernel: transformer_pallas.2
= control target key start
LH: loop header
LB: loop body
LE: loop exit
PB: predicated region body
PF: predicated region fallthrough
CT: control target
= control target key end

     0   :  { %19 = vsyncpa [#allocation3], 0  ;;  %s4381_s0 = inlined_call_operand.hbm [shape: f32[2,8,32], index: 0, kind: input, shape index: {}, may-alias: {0,14}]   ;;  %s4382_s1 = inlined_call_operand.hbm [shape: f32[1,32], index: 1, kind: input, shape index: {}]   ;;  %s4383_s2 = inlined_call_operand.hbm [shape: f32[1,32], index: 2, kind: input, shape index: {}]   ;;  %s4384_s3 = inlined_call_operand.hbm [shape: f32[4,32,8], index: 3, kind: input, shape index: {}]   ;;  %s4385_s4 = inlined_call_operand.hbm [shape: f32[4,32,8], index: 4, kind: input, shape index: {}]   ;;  %s4386_s5 = inlined_call_operand.hbm [shape: f32[4,32,8], index: 5, kind: input, shape index: {}]   ;;  %s4387_s6 = inlined_call_operand.hbm [shape: f32[32,32], index: 6, kind: input, shape index: {}]   ;;  %s4388_s7 = inlined_call_operand.hbm [shape: f32[1,32], index: 7, kind: input, shape index: {}]   ;;  %s4389_s8 = inlined_call_operand.hbm [shape: f32[1,32], index: 8, kind: input, shape index: {}]   ;;  %s4390_s9 = inlined_call_operand.hbm [shape: f32[1,32], index: 9, kind: input, shape index: {}]   ;;  %s4391_s10 = inlined_call_operand.hbm [shape: f32[32,64], index: 10, kind: input, shape index: {}]   ;;  %s4392_s11 = inlined_call_operand.hbm [shape: f32[1,64], index: 11, kind: input, shape index: {}]   ;;  %s4393_s12 = inlined_call_operand.hbm [shape: f32[64,32], index: 12, kind: input, shape index: {}]   ;;  %s4394_s13 = inlined_call_operand.hbm [shape: f32[1,32], index: 13, kind: input, shape index: {}]   ;;  %s4395_s14 = inlined_call_operand.hbm [shape: f32[2,8,32], index: 14, kind: output, shape index: {}, may-alias: {0,14}]  }
   0x1   :  { %20 = vsyncpa [#allocation6], 0 }
   0x2   :  { %21 = vsyncpa [#allocation9], 0 }
   0x3   :  { %22 = vsyncpa [#allocation12], 0 }
   0x4   :  { %23 = vsyncpa [#allocation15], 0 }
   0x5   :  { %24 = vsyncpa [#allocation18], 0 }
   0x6   :  { %25 = vsyncpa [#allocation21], 0 }
   0x7   :  { %26 = vsyncpa [#allocation24], 0 }
   0x8   :  { %27 = vsyncpa [#allocation4], 0  ;;  %s3885_s29 = smov [#allocation5]   ;;  %s3537_s17 = scalar_lea.hbm %s4382_s1, 16 }
   0x9   :  { %s46_s30 = sshll.u32 %s3885_s29, 4  ;;  %p3538_p0 = scmp.ne.s32.totalorder %s4382_s1, %s3537_s17  ;;  %s47_s30 = int_to_ptr.vmem [resolvable:$true] %s46_s30 }
   0xa   :  { %p3541_p1 = scmp.lt.u32.totalorder %s3537_s17, %s4382_s1 }
   0xc   :  { %p3543_p2 = pnand %p3541_p1, %p3538_p0 }
   0xe   :  { %3546 = shalt.err (!%p3543_p2)
}
   0xf   :  { %s3547_s22 = scalar_lea.vmem %s47_s30, 16  ;;  %s3551_s23 = scalar_lea.vmem %s47_s30, 32 }
  0x10   :  { %p3548_p3 = scmp.ne.s32.totalorder %s47_s30, %s3547_s22  ;;  %p3552_p4 = scmp.lt.s32.totalorder %s47_s30, %s47_s30 }
  0x11   :  { %p3553_p5 = scmp.lt.s32.totalorder %s3551_s23, %s3547_s22 }
  0x13   :  { %p3554_p6 = por %p3553_p5, %p3552_p4 }
  0x15   :  { %p3555_p7 = pnand %p3554_p6, %p3548_p3 }
  0x17   :  { %3558 = shalt.err (!%p3555_p7)
}
  0x18   :  { %49 = dma.hbm_to_vmem [thread:$0]  %s4382_s1, 16, %s47_s30, [#allocation6]  }
  0x19   :  { %s3886_s26 = smov [#allocation8]   ;;  %s3887_s28 = smov [#allocation11]  }
  0x1a   :  { %s65_s27 = sshll.u32 %s3886_s26, 4  ;;  %s89_s29 = sshll.u32 %s3887_s28, 4  ;;  %s66_s27 = int_to_ptr.vmem [resolvable:$true] %s65_s27  ;;  %s90_s29 = int_to_ptr.vmem [resolvable:$true] %s89_s29 }
  0x1b   :  { %s3559_s17 = scalar_lea.hbm %s4384_s3, 2048 }
  0x1c   :  { %p3560_p8 = scmp.ne.s32.totalorder %s4384_s3, %s3559_s17  ;;  %p3563_p9 = scmp.lt.u32.totalorder %s3559_s17, %s4384_s3 }
  0x1e   :  { %p3565_p10 = pnand %p3563_p9, %p3560_p8 }
  0x20   :  { %3568 = shalt.err (!%p3565_p10)
}
  0x21   :  { %s3569_s1 = scalar_lea.vmem %s66_s27, 2048  ;;  %p3574_p12 = scmp.lt.s32.totalorder %s66_s27, %s66_s27 }
  0x22   :  { %p3570_p11 = scmp.ne.s32.totalorder %s66_s27, %s3569_s1  ;;  %p3575_p13 = scmp.lt.s32.totalorder %s3569_s1, %s3569_s1 }
  0x24   :  { %p3576_p0 = por %p3575_p13, %p3574_p12 }
  0x26   :  { %p3577_p1 = pnand %p3576_p0, %p3570_p11 }
  0x28   :  { %3580 = shalt.err (!%p3577_p1)
}
  0x29   :  { %s3888_s30 = smov 128   ;;  %s3889_s22 = smov 8  }
  0x2a   :  { %71 = dma.hbm_to_vmem [thread:$0]  %s4384_s3, 2048, %s66_s27, [#allocation9], %s3888_s30, %s3888_s30, %s3889_s22  }
  0x2b   :  { %s3581_s28 = scalar_lea.hbm %s4386_s5, 2048 }
  0x2c   :  { %p3582_p2 = scmp.ne.s32.totalorder %s4386_s5, %s3581_s28  ;;  %p3585_p3 = scmp.lt.u32.totalorder %s3581_s28, %s4386_s5 }
  0x2e   :  { %p3587_p4 = pnand %p3585_p3, %p3582_p2 }
  0x30   :  { %3590 = shalt.err (!%p3587_p4)
}
  0x31   :  { %s3591_s19 = scalar_lea.vmem %s90_s29, 2048  ;;  %p3596_p6 = scmp.lt.s32.totalorder %s90_s29, %s90_s29 }
  0x32   :  { %p3592_p5 = scmp.ne.s32.totalorder %s90_s29, %s3591_s19  ;;  %p3597_p7 = scmp.lt.s32.totalorder %s3591_s19, %s3591_s19 }
  0x34   :  { %p3598_p8 = por %p3597_p7, %p3596_p6 }
  0x36   :  { %p3599_p9 = pnand %p3598_p8, %p3592_p5 }
  0x38   :  { %3602 = shalt.err (!%p3599_p9)
}
  0x39   :  { %95 = dma.hbm_to_vmem [thread:$0]  %s4386_s5, 2048, %s90_s29, [#allocation12], %s3888_s30, %s3888_s30, %s3889_s22  }
  0x3a   :  { %s3890_s20 = smov [#allocation14]   ;;  %s3891_s1 = smov [#allocation17]  }
  0x3b   :  { %s114_s21 = sshll.u32 %s3890_s20, 4  ;;  %s134_s23 = sshll.u32 %s3891_s1, 4  ;;  %s115_s21 = int_to_ptr.vmem [resolvable:$true] %s114_s21  ;;  %s135_s23 = int_to_ptr.vmem [resolvable:$true] %s134_s23 }
  0x3c   :  { %s3603_s26 = scalar_lea.hbm %s4388_s7, 16 }
  0x3d   :  { %p3604_p10 = scmp.ne.s32.totalorder %s4388_s7, %s3603_s26  ;;  %p3607_p11 = scmp.lt.u32.totalorder %s3603_s26, %s4388_s7 }
  0x3f   :  { %p3609_p12 = pnand %p3607_p11, %p3604_p10 }
  0x41   :  { %3612 = shalt.err (!%p3609_p12)
}
  0x42   :  { %s3613_s5 = scalar_lea.vmem %s115_s21, 16  ;;  %s3617_s29 = scalar_lea.vmem %s115_s21, 32 }
  0x43   :  { %p3614_p13 = scmp.ne.s32.totalorder %s115_s21, %s3613_s5  ;;  %p3618_p0 = scmp.lt.s32.totalorder %s115_s21, %s115_s21 }
  0x44   :  { %p3619_p1 = scmp.lt.s32.totalorder %s3617_s29, %s3613_s5 }
  0x46   :  { %p3620_p2 = por %p3619_p1, %p3618_p0 }
  0x48   :  { %p3621_p3 = pnand %p3620_p2, %p3614_p13 }
  0x4a   :  { %3624 = shalt.err (!%p3621_p3)
}
  0x4b   :  { %117 = dma.hbm_to_vmem [thread:$0]  %s4388_s7, 16, %s115_s21, [#allocation15]  }
  0x4c   :  { %s3625_s20 = scalar_lea.hbm %s4390_s9, 16 }
  0x4d   :  { %p3626_p4 = scmp.ne.s32.totalorder %s4390_s9, %s3625_s20  ;;  %p3629_p5 = scmp.lt.u32.totalorder %s3625_s20, %s4390_s9 }
  0x4f   :  { %p3631_p6 = pnand %p3629_p5, %p3626_p4 }
  0x51   :  { %3634 = shalt.err (!%p3631_p6)
}
  0x52   :  { %s3635_s28 = scalar_lea.vmem %s135_s23, 16  ;;  %s3639_s15 = scalar_lea.vmem %s135_s23, 32 }
  0x53   :  { %p3636_p7 = scmp.ne.s32.totalorder %s135_s23, %s3635_s28  ;;  %p3640_p8 = scmp.lt.s32.totalorder %s135_s23, %s135_s23 }
  0x54   :  { %p3641_p9 = scmp.lt.s32.totalorder %s3639_s15, %s3635_s28 }
  0x56   :  { %p3642_p10 = por %p3641_p9, %p3640_p8 }
  0x58   :  { %p3643_p11 = pnand %p3642_p10, %p3636_p7 }
  0x5a   :  { %3646 = shalt.err (!%p3643_p11)
}
  0x5b   :  { %137 = dma.hbm_to_vmem [thread:$0]  %s4390_s9, 16, %s135_s23, [#allocation18]  }
  0x5c   :  { %s3892_s16 = smov [#allocation20]   ;;  %s3893_s5 = smov [#allocation2]  }
  0x5d   :  { %s156_s17 = sshll.u32 %s3892_s16, 4  ;;  %s33_s29 = sshll.u32 %s3893_s5, 4  ;;  %s157_s17 = int_to_ptr.vmem [resolvable:$true] %s156_s17  ;;  %s34_s29 = int_to_ptr.vmem [resolvable:$true] %s33_s29 }
  0x5e   :  { %s3647_s3 = scalar_lea.hbm %s4392_s11, 16 }
  0x5f   :  { %p3648_p12 = scmp.ne.s32.totalorder %s4392_s11, %s3647_s3  ;;  %p3651_p13 = scmp.lt.u32.totalorder %s3647_s3, %s4392_s11 }
  0x61   :  { %p3653_p0 = pnand %p3651_p13, %p3648_p12 }
  0x63   :  { %3656 = shalt.err (!%p3653_p0)
}
  0x64   :  { %s3657_s9 = scalar_lea.vmem %s157_s17, 16  ;;  %s3661_s23 = scalar_lea.vmem %s157_s17, 32 }
  0x65   :  { %p3658_p1 = scmp.ne.s32.totalorder %s157_s17, %s3657_s9  ;;  %p3662_p2 = scmp.lt.s32.totalorder %s157_s17, %s157_s17 }
  0x66   :  { %p3663_p3 = scmp.lt.s32.totalorder %s3661_s23, %s3657_s9 }
  0x68   :  { %p3664_p4 = por %p3663_p3, %p3662_p2 }
  0x6a   :  { %p3665_p5 = pnand %p3664_p4, %p3658_p1 }
  0x6c   :  { %3668 = shalt.err (!%p3665_p5)
}
  0x6d   :  { %159 = dma.hbm_to_vmem [thread:$0]  %s4392_s11, 16, %s157_s17, [#allocation21]  }
  0x6e   :  { %s3669_s7 = scalar_lea.hbm %s4381_s0, 256 }
  0x6f   :  { %p3670_p6 = scmp.ne.s32.totalorder %s4381_s0, %s3669_s7  ;;  %p3673_p7 = scmp.lt.u32.totalorder %s3669_s7, %s4381_s0 }
  0x71   :  { %p3675_p8 = pnand %p3673_p7, %p3670_p6 }
  0x73   :  { %3678 = shalt.err (!%p3675_p8)
}
  0x74   :  { %s3679_s19 = scalar_lea.vmem %s34_s29, 256  ;;  %p3684_p10 = scmp.lt.s32.totalorder %s34_s29, %s34_s29 }
  0x75   :  { %p3680_p9 = scmp.ne.s32.totalorder %s34_s29, %s3679_s19  ;;  %p3685_p11 = scmp.lt.s32.totalorder %s3679_s19, %s3679_s19 }
  0x77   :  { %p3686_p12 = por %p3685_p11, %p3684_p10 }
  0x79   :  { %p3687_p13 = pnand %p3686_p12, %p3680_p9 }
  0x7b   :  { %3690 = shalt.err (!%p3687_p13)
}
  0x7c   :  { %39 = dma.hbm_to_vmem [thread:$0]  %s4381_s0, 256, %s34_s29, [#allocation3], %s3888_s30, %s3888_s30, %s3889_s22  }
  0x7d   :  { %s3894_s3 = smov [#allocation7]   ;;  %s3895_s20 = smov [#allocation10]  }
  0x7e   :  { %s56_s27 = sshll.u32 %s3894_s3, 4  ;;  %s77_s1 = sshll.u32 %s3895_s20, 4  ;;  %s57_s27 = int_to_ptr.vmem [resolvable:$true] %s56_s27  ;;  %s78_s1 = int_to_ptr.vmem [resolvable:$true] %s77_s1 }
  0x7f   :  { %s3691_s23 = scalar_lea.hbm %s4383_s2, 16 }
  0x80   :  { %p3692_p0 = scmp.ne.s32.totalorder %s4383_s2, %s3691_s23  ;;  %p3695_p1 = scmp.lt.u32.totalorder %s3691_s23, %s4383_s2 }
  0x82   :  { %p3697_p2 = pnand %p3695_p1, %p3692_p0 }
  0x84   :  { %3700 = shalt.err (!%p3697_p2)
}
  0x85   :  { %s3701_s0 = scalar_lea.vmem %s57_s27, 16  ;;  %s3705_s29 = scalar_lea.vmem %s57_s27, 32 }
  0x86   :  { %p3702_p3 = scmp.ne.s32.totalorder %s57_s27, %s3701_s0  ;;  %p3706_p4 = scmp.lt.s32.totalorder %s57_s27, %s57_s27 }
  0x87   :  { %p3707_p5 = scmp.lt.s32.totalorder %s3705_s29, %s3701_s0 }
  0x89   :  { %p3708_p6 = por %p3707_p5, %p3706_p4 }
  0x8b   :  { %p3709_p7 = pnand %p3708_p6, %p3702_p3 }
  0x8d   :  { %3712 = shalt.err (!%p3709_p7)
}
  0x8e   :  { %59 = dma.hbm_to_vmem [thread:$0]  %s4383_s2, 16, %s57_s27, [#allocation6]  }
  0x8f   :  { %s3713_s18 = scalar_lea.hbm %s4385_s4, 2048 }
  0x90   :  { %p3714_p8 = scmp.ne.s32.totalorder %s4385_s4, %s3713_s18  ;;  %p3717_p9 = scmp.lt.u32.totalorder %s3713_s18, %s4385_s4 }
  0x92   :  { %p3719_p10 = pnand %p3717_p9, %p3714_p8 }
  0x94   :  { %3722 = shalt.err (!%p3719_p10)
}
  0x95   :  { %s3723_s20 = scalar_lea.vmem %s78_s1, 2048  ;;  %p3728_p12 = scmp.lt.s32.totalorder %s78_s1, %s78_s1 }
  0x96   :  { %p3724_p11 = scmp.ne.s32.totalorder %s78_s1, %s3723_s20  ;;  %p3729_p13 = scmp.lt.s32.totalorder %s3723_s20, %s3723_s20 }
  0x98   :  { %p3730_p0 = por %p3729_p13, %p3728_p12 }
  0x9a   :  { %p3731_p1 = pnand %p3730_p0, %p3724_p11 }
  0x9c   :  { %3734 = shalt.err (!%p3731_p1)
}
  0x9d   :  { %83 = dma.hbm_to_vmem [thread:$0]  %s4385_s4, 2048, %s78_s1, [#allocation9], %s3888_s30, %s3888_s30, %s3889_s22  }
  0x9e   :  { %s3896_s24 = smov [#allocation13]   ;;  %s3897_s23 = smov [#allocation16]  }
  0x9f   :  { %s101_s9 = sshll.u32 %s3896_s24, 4  ;;  %s124_s25 = sshll.u32 %s3897_s23, 4  ;;  %s102_s9 = int_to_ptr.vmem [resolvable:$true] %s101_s9  ;;  %s125_s25 = int_to_ptr.vmem [resolvable:$true] %s124_s25 }
  0xa0   :  { %s3735_s15 = scalar_lea.hbm %s4387_s6, 512 }
  0xa1   :  { %p3736_p2 = scmp.ne.s32.totalorder %s4387_s6, %s3735_s15  ;;  %p3739_p3 = scmp.lt.u32.totalorder %s3735_s15, %s4387_s6 }
  0xa3   :  { %p3741_p4 = pnand %p3739_p3, %p3736_p2 }
  0xa5   :  { %3744 = shalt.err (!%p3741_p4)
}
  0xa6   :  { %s3745_s4 = scalar_lea.vmem %s102_s9, 512  ;;  %p3750_p6 = scmp.lt.s32.totalorder %s102_s9, %s102_s9 }
  0xa7   :  { %p3746_p5 = scmp.ne.s32.totalorder %s102_s9, %s3745_s4  ;;  %p3751_p7 = scmp.lt.s32.totalorder %s3745_s4, %s3745_s4 }
  0xa9   :  { %p3752_p8 = por %p3751_p7, %p3750_p6 }
  0xab   :  { %p3753_p9 = pnand %p3752_p8, %p3746_p5 }
  0xad   :  { %3756 = shalt.err (!%p3753_p9)
}
  0xae   :  { %107 = dma.hbm_to_vmem [thread:$0]  %s4387_s6, 512, %s102_s9, [#allocation12], %s3888_s30, %s3888_s30, %s3889_s22  }
  0xaf   :  { %s3757_s19 = scalar_lea.hbm %s4389_s8, 16 }
  0xb0   :  { %p3758_p10 = scmp.ne.s32.totalorder %s4389_s8, %s3757_s19  ;;  %p3761_p11 = scmp.lt.u32.totalorder %s3757_s19, %s4389_s8 }
  0xb2   :  { %p3763_p12 = pnand %p3761_p11, %p3758_p10 }
  0xb4   :  { %3766 = shalt.err (!%p3763_p12)
}
  0xb5   :  { %s3767_s2 = scalar_lea.vmem %s125_s25, 16  ;;  %s3771_s27 = scalar_lea.vmem %s125_s25, 32 }
  0xb6   :  { %p3768_p13 = scmp.ne.s32.totalorder %s125_s25, %s3767_s2  ;;  %p3772_p0 = scmp.lt.s32.totalorder %s125_s25, %s125_s25 }
  0xb7   :  { %p3773_p1 = scmp.lt.s32.totalorder %s3771_s27, %s3767_s2 }
  0xb9   :  { %p3774_p2 = por %p3773_p1, %p3772_p0 }
  0xbb   :  { %p3775_p3 = pnand %p3774_p2, %p3768_p13 }
  0xbd   :  { %3778 = shalt.err (!%p3775_p3)
}
  0xbe   :  { %127 = dma.hbm_to_vmem [thread:$0]  %s4389_s8, 16, %s125_s25, [#allocation15]  }
  0xbf   :  { %s3898_s9 = smov [#allocation19]   ;;  %s3899_s26 = smov [#allocation22]  }
  0xc0   :  { %s143_s23 = sshll.u32 %s3898_s9, 4  ;;  %s165_s28 = sshll.u32 %s3899_s26, 4  ;;  %s144_s23 = int_to_ptr.vmem [resolvable:$true] %s143_s23  ;;  %s166_s28 = int_to_ptr.vmem [resolvable:$true] %s165_s28 }
  0xc1   :  { %s3779_s29 = scalar_lea.hbm %s4391_s10, 512 }
  0xc2   :  { %p3780_p4 = scmp.ne.s32.totalorder %s4391_s10, %s3779_s29  ;;  %p3783_p5 = scmp.lt.u32.totalorder %s3779_s29, %s4391_s10 }
  0xc4   :  { %p3785_p6 = pnand %p3783_p5, %p3780_p4 }
  0xc6   :  { %3788 = shalt.err (!%p3785_p6)
}
  0xc7   :  { %s3789_s8 = scalar_lea.vmem %s144_s23, 512  ;;  %p3794_p8 = scmp.lt.s32.totalorder %s144_s23, %s144_s23 }
  0xc8   :  { %p3790_p7 = scmp.ne.s32.totalorder %s144_s23, %s3789_s8  ;;  %p3795_p9 = scmp.lt.s32.totalorder %s3789_s8, %s3789_s8 }
  0xca   :  { %p3796_p10 = por %p3795_p9, %p3794_p8 }
  0xcc   :  { %p3797_p11 = pnand %p3796_p10, %p3790_p7 }
  0xce   :  { %3800 = shalt.err (!%p3797_p11)
}
  0xcf   :  { %149 = dma.hbm_to_vmem [thread:$0]  %s4391_s10, 512, %s144_s23, [#allocation18], %s3888_s30, %s3888_s30, %s3889_s22  }
  0xd0   :  { %s3801_s19 = scalar_lea.hbm %s4393_s12, 1024 }
  0xd1   :  { %p3802_p12 = scmp.ne.s32.totalorder %s4393_s12, %s3801_s19  ;;  %p3805_p13 = scmp.lt.u32.totalorder %s3801_s19, %s4393_s12 }
  0xd3   :  { %p3807_p0 = pnand %p3805_p13, %p3802_p12 }
  0xd5   :  { %3810 = shalt.err (!%p3807_p0)
}
  0xd6   :  { %s3811_s2 = scalar_lea.vmem %s166_s28, 1024  ;;  %p3816_p2 = scmp.lt.s32.totalorder %s166_s28, %s166_s28 }
  0xd7   :  { %p3812_p1 = scmp.ne.s32.totalorder %s166_s28, %s3811_s2  ;;  %p3817_p3 = scmp.lt.s32.totalorder %s3811_s2, %s3811_s2 }
  0xd9   :  { %p3818_p4 = por %p3817_p3, %p3816_p2 }
  0xdb   :  { %p3819_p5 = pnand %p3818_p4, %p3812_p1 }
  0xdd   :  { %3822 = shalt.err (!%p3819_p5)
}
  0xde   :  { %171 = dma.hbm_to_vmem [thread:$0]  %s4393_s12, 1024, %s166_s28, [#allocation21], %s3888_s30, %s3888_s30, %s3889_s22  }
  0xdf   :  { %s3900_s6 = smov [#allocation23]   ;;  %s3823_s26 = scalar_lea.hbm %s4394_s13, 16 }
  0xe0   :  { %s178_s24 = sshll.u32 %s3900_s6, 4  ;;  %p3824_p6 = scmp.ne.s32.totalorder %s4394_s13, %s3823_s26  ;;  %s179_s24 = int_to_ptr.vmem [resolvable:$true] %s178_s24 }
  0xe1   :  { %p3827_p7 = scmp.lt.u32.totalorder %s3823_s26, %s4394_s13 }
  0xe3   :  { %p3829_p8 = pnand %p3827_p7, %p3824_p6 }
  0xe5   :  { %3832 = shalt.err (!%p3829_p8)
}
  0xe6   :  { %s3833_s21 = scalar_lea.vmem %s179_s24, 16  ;;  %s3837_s12 = scalar_lea.vmem %s179_s24, 32 }
  0xe7   :  { %p3834_p9 = scmp.ne.s32.totalorder %s179_s24, %s3833_s21  ;;  %p3838_p10 = scmp.lt.s32.totalorder %s179_s24, %s179_s24 }
  0xe8   :  { %p3839_p11 = scmp.lt.s32.totalorder %s3837_s12, %s3833_s21 }
  0xea   :  { %p3840_p12 = por %p3839_p11, %p3838_p10 }
  0xec   :  { %p3841_p13 = pnand %p3840_p12, %p3834_p9 }
  0xee   :  { %3844 = shalt.err (!%p3841_p13)
}
  0xef   :  { %181 = dma.hbm_to_vmem [thread:$0]  %s4394_s13, 16, %s179_s24, [#allocation24]  }
  0xf0   :  { %3867 = dma.done.wait [#allocation3], 256  }
  0xf1   :  { %3868 = vsyncadd [#allocation3], 4294967040 }
  0xf2   :  { %3869 = dma.done.wait [#allocation6], 32  }
  0xf3   :  { %3870 = vsyncadd [#allocation6], 4294967264 }
  0xf4   :  { %3871 = dma.done.wait [#allocation9], 4096  }
  0xf5   :  { %3872 = vsyncadd [#allocation9], 4294963200 }
  0xf6   :  { %3873 = dma.done.wait [#allocation12], 2560  }
  0xf7   :  { %3874 = vsyncadd [#allocation12], 4294964736 }
  0xf8   :  { %3875 = dma.done.wait [#allocation15], 32  }
  0xf9   :  { %3876 = vsyncadd [#allocation15], 4294967264 }
  0xfa   :  { %3877 = dma.done.wait [#allocation18], 528  }
  0xfb   :  { %3878 = vsyncadd [#allocation18], 4294966768 }
  0xfc   :  { %3879 = dma.done.wait [#allocation21], 1040  }
  0xfd   :  { %3880 = vsyncadd [#allocation21], 4294966256 }
  0xfe   :  { %3881 = dma.done.wait [#allocation24], 16  }
  0xff   :  { %3882 = vsyncadd [#allocation24], 4294967280  ;;  %vm228_vm0 = vcmask 261120   ;;  %v4170_v0 = vld [vmem:[#allocation2] sm:$0xff]  ;;  %v4172_v1 = vld [vmem:[#allocation2 + $0x8] sm:$0xff]  ;;  %vm3902_vm1 = vmmov 0  }
 0x100   :  { %v229_v2 = vsel %vm228_vm0, %v4170_v0, 0.0  ;;  %v232_v3 = vsel %vm228_vm0, %v4172_v1, 0.0  ;;  %v272_v14 = vld [vmem:[#allocation8] sm:$0xff]  ;;  %v273_v15 = vld [vmem:[#allocation8 + $0x8] sm:$0xff]  ;;  %v274_v20 = vld [vmem:[#allocation8 + $0x10] sm:$0xff]  ;;  %vm1226_vm2 = vcmask 64512  }
 0x101   :  { %230 = vadd.xlane.f32.xlu0 %v229_v2  ;;  %v280_v16 = vld [vmem:[#allocation8 + $0x40] sm:$0xff]  ;;  %v3344_v17 = vpack.c.bf16 %v273_v15, %v272_v14  ;;  %v281_v18 = vld [vmem:[#allocation8 + $0x48] sm:$0xff]  ;;  %v275_v21 = vld [vmem:[#allocation8 + $0x18] sm:$0xff]  ;;  %s3903_s13 = smov 16   ;;  %s3904_s1 = smov 24   ;;  %vm2536_vm3 = vcmask 195584  }
 0x102   :  { %v3360_v19 = vpack.c.bf16 %v281_v18, %v280_v16  ;;  %v282_v22 = vld [vmem:[#allocation8 + $0x50] sm:$0xff]  ;;  %v3348_v23 = vpack.c.bf16 %v275_v21, %v274_v20  ;;  %v283_v24 = vld [vmem:[#allocation8 + $0x58] sm:$0xff]  ;;  %v276_v26 = vld [vmem:[#allocation8 + $0x20] sm:$0xff]  ;;  %vm2533_vm4 = vcmask 130048   ;;  %vm2794_vm5 = vcmask 523264   ;;  %s3905_s8 = smov [#allocation25]  }
 0x103   :  { %3345 = vmatprep.subr.bf16.mxu1 %v3344_v17  ;;  %v3364_v25 = vpack.c.bf16 %v283_v24, %v282_v22  ;;  %v277_v27 = vld [vmem:[#allocation8 + $0x28] sm:$0xff]  ;;  %v594_v28 = vld [vmem:[#allocation10] sm:$0xff]  ;;  %v2904_v39 = vld [vmem:[#allocation5] ss:$0 sm:$0xff]  ;;  %s2885_s25 = sshll.u32 %s3905_s8, 4  ;;  %s2886_s25 = int_to_ptr.vmem [resolvable:$true] %s2885_s25 }
 0x104   :  { %3361 = vmatprep.subr.bf16.mxu0 %v3360_v19  ;;  %3347 = vmatpush3.bf16.msra.mxu1 %v3344_v17  ;;  %v3352_v29 = vpack.c.bf16 %v277_v27, %v276_v26  ;;  %v595_v30 = vld [vmem:[#allocation10 + $0x8] sm:$0xff]  ;;  %v2905_v41 = vld [vmem:[#allocation7] ss:$0 sm:$0xff]  ;;  %v278_v46 = vld [vmem:[#allocation8 + $0x30] sm:$0xff]  ;;  %s3845_s16 = scalar_lea.vmem %s2886_s25, 256  ;;  %p3850_p1 = scmp.lt.s32.totalorder %s2886_s25, %s2886_s25 }
 0x105   :  { %233 = vadd.xlane.f32.xlu0 %v232_v3  ;;  %3363 = vmatpush3.bf16.msra.mxu0 %v3360_v19  ;;  %v3376_v31 = vpack.c.bf16 %v595_v30, %v594_v28  ;;  %v279_v48 = vld [vmem:[#allocation8 + $0x38] sm:$0xff]  ;;  %v596_v49 = vld [vmem:[#allocation10 + $0x10] sm:$0xff]  ;;  %v284_v52 = vld [vmem:[#allocation8 + $0x60] sm:$0xff]  ;;  %p3846_p0 = scmp.ne.s32.totalorder %s2886_s25, %s3845_s16  ;;  %p3851_p2 = scmp.lt.s32.totalorder %s3845_s16, %s3845_s16 }
 0x106   :  { %3349 = vmatprep.subr.bf16.mxu1 %v3348_v23  ;;  %3365 = vmatprep.subr.bf16.mxu0 %v3364_v25  ;;  %v597_v50 = vld [vmem:[#allocation10 + $0x18] sm:$0xff]  ;;  %v3356_v53 = vpack.c.bf16 %v279_v48, %v278_v46  ;;  %v285_v55 = vld [vmem:[#allocation8 + $0x68] sm:$0xff]  ;;  %v602_v56 = vld [vmem:[#allocation10 + $0x40] sm:$0xff] }
 0x107   :  { %v3380_v54 = vpack.c.bf16 %v597_v50, %v596_v49  ;;  %v603_v57 = vld [vmem:[#allocation10 + $0x48] sm:$0xff]  ;;  %v3368_v58 = vpack.c.bf16 %v285_v55, %v284_v52  ;;  %v286_v60 = vld [vmem:[#allocation8 + $0x70] sm:$0xff]  ;;  %v287_v61 = vld [vmem:[#allocation8 + $0x78] sm:$0xff]  ;;  %p3852_p3 = por %p3851_p2, %p3850_p1 }
 0x108   :  { %3351 = vmatpush3.bf16.msra.mxu1 %v3348_v23  ;;  %v3392_v59 = vpack.c.bf16 %v603_v57, %v602_v56  ;;  %v604_v62 = vld [vmem:[#allocation10 + $0x50] sm:$0xff]  ;;  %v605_v63 = vld [vmem:[#allocation10 + $0x58] sm:$0xff]  ;;  %v3372_v2 = vpack.c.bf16 %v287_v61, %v286_v60  ;;  %v606_v15 = vld [vmem:[#allocation10 + $0x60] sm:$0xff] }
 0x109   :  { %3367 = vmatpush3.bf16.msra.mxu0 %v3364_v25  ;;  %3353 = vmatprep.subr.bf16.mxu1 %v3352_v29  ;;  %v3396_v3 = vpack.c.bf16 %v605_v63, %v604_v62  ;;  %v607_v16 = vld [vmem:[#allocation10 + $0x68] sm:$0xff]  ;;  %v918_v18 = vld [vmem:[#allocation11 + $0x40] sm:$0xff]  ;;  %v608_v22 = vld [vmem:[#allocation10 + $0x70] sm:$0xff]  ;;  %p3853_p4 = pnand %p3852_p3, %p3846_p0 }
 0x10a   :  { %3377 = vmatprep.subr.bf16.mxu0 %v3376_v31  ;;  %v919_v19 = vld [vmem:[#allocation11 + $0x48] sm:$0xff]  ;;  %v3400_v20 = vpack.c.bf16 %v607_v16, %v606_v15  ;;  %v609_v23 = vld [vmem:[#allocation10 + $0x78] sm:$0xff]  ;;  %v920_v24 = vld [vmem:[#allocation11 + $0x50] sm:$0xff] }
 0x10b   :  { %v3424_v21 = vpack.c.bf16 %v919_v19, %v918_v18  ;;  %v921_v25 = vld [vmem:[#allocation11 + $0x58] sm:$0xff]  ;;  %v3404_v26 = vpack.c.bf16 %v609_v23, %v608_v22  ;;  %v914_v27 = vld [vmem:[#allocation11 + $0x20] sm:$0xff]  ;;  %v915_v28 = vld [vmem:[#allocation11 + $0x28] sm:$0xff] }
 0x10c   :  { %v3416_v30 = vpack.c.bf16 %v915_v28, %v914_v27 }
 0x18e   :  { %v231_v4 = vpop.xlane.xlu0 %230 }
 0x18f   :  { %v236_v5 = vmul.f32 0.03125, %v231_v4  ;;  %v598_v4 = vld [vmem:[#allocation10 + $0x20] sm:$0xff] }
 0x191   :  { %v238_v6 = vsub.f32 %v4170_v0, %v236_v5  ;;  %v599_v5 = vld [vmem:[#allocation10 + $0x28] sm:$0xff] }
 0x192   :  { %v234_v7 = vpop.xlane.xlu0 %233 }
 0x193   :  { %v237_v8 = vmul.f32 0.03125, %v234_v7  ;;  %v240_v9 = vmul.f32 %v238_v6, %v238_v6  ;;  %v911_v7 = vld [vmem:[#allocation11 + $0x8] sm:$0xff] }
 0x195   :  { %v239_v10 = vsub.f32 %v4172_v1, %v237_v8  ;;  %v242_v11 = vsel %vm228_vm0, %v240_v9, 0.0  ;;  %v3384_v8 = vpack.c.bf16 %v599_v5, %v598_v4 }
 0x196   :  { %243 = vadd.xlane.f32.xlu1 %v242_v11  ;;  %v601_v11 = vld [vmem:[#allocation10 + $0x38] sm:$0xff] }
 0x197   :  { %v241_v12 = vmul.f32 %v239_v10, %v239_v10 }
 0x199   :  { %v245_v13 = vsel %vm228_vm0, %v241_v12, 0.0  ;;  %v912_v12 = vld [vmem:[#allocation11 + $0x10] sm:$0xff] }
 0x19a   :  { %246 = vadd.xlane.f32.xlu1 %v245_v13  ;;  %v913_v13 = vld [vmem:[#allocation11 + $0x18] sm:$0xff] }
 0x19b   :  { %v3412_v17 = vpack.c.bf16 %v913_v13, %v912_v12 }
 0x223   :  { %v244_v32 = vpop.xlane.xlu1 %243 }
 0x224   :  { %v248_v33 = vmul.f32 0.03125, %v244_v32  ;;  %v917_v32 = vld [vmem:[#allocation11 + $0x38] sm:$0xff] }
 0x226   :  { %v250_v34 = vadd.f32 1e-05, %v248_v33 }
 0x227   :  { %v247_v35 = vpop.xlane.xlu1 %246 }
 0x228   :  { %3493 = vrsqrt.f32 %v250_v34  ;;  %v249_v36 = vmul.f32 0.03125, %v247_v35  ;;  %v922_v34 = vld [vmem:[#allocation11 + $0x60] sm:$0xff]  ;;  %v923_v35 = vld [vmem:[#allocation11 + $0x68] sm:$0xff] }
 0x22a   :  { %v251_v37 = vadd.f32 1e-05, %v249_v36  ;;  %v3432_v36 = vpack.c.bf16 %v923_v35, %v922_v34 }
 0x22c   :  { %3495 = vrsqrt.f32 %v251_v37  ;;  %v924_v37 = vld [vmem:[#allocation11 + $0x70] sm:$0xff] }
 0x232   :  { %v3494_v38 = vpop.eup %3493 }
 0x233   :  { %v254_v40 = vmul.f32 %v3494_v38, %v238_v6  ;;  %v910_v6 = vld [vmem:[#allocation11] sm:$0xff]  ;;  %v925_v38 = vld [vmem:[#allocation11 + $0x78] sm:$0xff] }
 0x234   :  { %v3408_v9 = vpack.c.bf16 %v911_v7, %v910_v6 }
 0x235   :  { %v262_v42 = vmul.f32 %v2904_v39, %v254_v40  ;;  %v3901_v40 = vmov 0.0  }
 0x236   :  { %v3496_v43 = vpop.eup %3495 }
 0x237   :  { %v4182_v44 = vadd.f32 %v2905_v41, %v262_v42  ;;  %v255_v45 = vmul.f32 %v3496_v43, %v239_v10  ;;  %v600_v10 = vld [vmem:[#allocation10 + $0x30] sm:$0xff] }
 0x238   :  { %v3388_v14 = vpack.c.bf16 %v601_v11, %v600_v10 }
 0x239   :  { %v263_v47 = vmul.f32 %v2904_v39, %v255_v45  ;;  %3099 = vmatprep.mubr.msk.f32.mxu1 %vm228_vm0, %v4182_v44  ;;  %3121 = vmatprep.mubr.msk.f32.mxu0 %vm228_vm0, %v4182_v44  ;;  %v3436_v39 = vpack.c.bf16 %v925_v38, %v924_v37 }
 0x23b   :  { %v4188_v51 = vadd.f32 %v2905_v41, %v263_v47 }
 0x23d   :  { %3100 = vmatmul.mubr.msk.f32.vlgmr.msra.gmra.mrb[0].mxu1 %vm228_vm0, %v4188_v51  ;;  %3122 = vmatmul.mubr.msk.f32.vlgmr.msra.gmra.mrb[0].mxu0 %vm228_vm0, %v4188_v51 }
 0x23e   :  { %3355 = vmatpush3.bf16.msra.mxu1 %v3352_v29  ;;  %3379 = vmatpush3.bf16.msra.mxu0 %v3376_v31  ;;  %v3428_v29 = vpack.c.bf16 %v921_v25, %v920_v24  ;;  %v916_v31 = vld [vmem:[#allocation11 + $0x30] sm:$0xff] }
 0x23f   :  { %3110 = vmatprep.mubr.msk.f32.mxu1 %vm228_vm0, %v4182_v44  ;;  %3143 = vmatprep.mubr.msk.f32.mxu0 %vm228_vm0, %v4182_v44  ;;  %v3420_v33 = vpack.c.bf16 %v917_v32, %v916_v31 }
 0x240   :  { %3357 = vmatprep.subr.bf16.mxu1 %v3356_v53  ;;  %3381 = vmatprep.subr.bf16.mxu0 %v3380_v54 }
 0x242   :  { %3359 = vmatpush3.bf16.msra.mxu1 %v3356_v53  ;;  %3383 = vmatpush3.bf16.msra.mxu0 %v3380_v54 }
 0x243   :  { %3369 = vmatprep.subr.bf16.mxu1 %v3368_v58  ;;  %3393 = vmatprep.subr.bf16.mxu0 %v3392_v59 }
 0x245   :  { %3111 = vmatmul.mubr.msk.f32.vlgmr.msra.gmra.mrb[2].mxu1 %vm228_vm0, %v4188_v51  ;;  %3144 = vmatmul.mubr.msk.f32.vlgmr.msra.gmra.mrb[2].mxu0 %vm228_vm0, %v4188_v51 }
 0x246   :  { %3371 = vmatpush3.bf16.msra.mxu1 %v3368_v58  ;;  %3132 = vmatprep.mubr.msk.f32.mxu1 %vm228_vm0, %v4182_v44 }
 0x247   :  { %3395 = vmatpush3.bf16.msra.mxu0 %v3392_v59  ;;  %3165 = vmatprep.mubr.msk.f32.mxu0 %vm228_vm0, %v4182_v44 }
 0x248   :  { %3373 = vmatprep.subr.bf16.mxu1 %v3372_v2  ;;  %3397 = vmatprep.subr.bf16.mxu0 %v3396_v3 }
 0x24a   :  { %3375 = vmatpush3.bf16.msra.mxu1 %v3372_v2 }
 0x24b   :  { %3399 = vmatpush3.bf16.msra.mxu0 %v3396_v3  ;;  %3385 = vmatprep.subr.bf16.mxu1 %v3384_v8 }
 0x24c   :  { %3409 = vmatprep.subr.bf16.mxu0 %v3408_v9 }
 0x24d   :  { %3133 = vmatmul.mubr.msk.f32.vlgmr.msra.gmra.mrb[4].mxu1 %vm228_vm0, %v4188_v51 }
 0x24e   :  { %3166 = vmatmul.mubr.msk.f32.vlgmr.msra.gmra.mrb[4].mxu0 %vm228_vm0, %v4188_v51  ;;  %3387 = vmatpush3.bf16.msra.mxu1 %v3384_v8 }
 0x24f   :  { %3154 = vmatprep.mubr.msk.f32.mxu1 %vm228_vm0, %v4182_v44  ;;  %3411 = vmatpush3.bf16.msra.mxu0 %v3408_v9 }
 0x250   :  { %3187 = vmatprep.mubr.msk.f32.mxu0 %vm228_vm0, %v4182_v44  ;;  %3389 = vmatprep.subr.bf16.mxu1 %v3388_v14 }
 0x251   :  { %3413 = vmatprep.subr.bf16.mxu0 %v3412_v17 }
 0x252   :  { %3391 = vmatpush3.bf16.msra.mxu1 %v3388_v14 }
 0x253   :  { %3415 = vmatpush3.bf16.msra.mxu0 %v3412_v17  ;;  %3401 = vmatprep.subr.bf16.mxu1 %v3400_v20 }
 0x254   :  { %3425 = vmatprep.subr.bf16.mxu0 %v3424_v21 }
 0x255   :  { %3155 = vmatmul.mubr.msk.f32.vlgmr.msra.gmra.mrb[6].mxu1 %vm228_vm0, %v4188_v51 }
 0x256   :  { %3188 = vmatmul.mubr.msk.f32.vlgmr.msra.gmra.mrb[6].mxu0 %vm228_vm0, %v4188_v51  ;;  %3403 = vmatpush3.bf16.msra.mxu1 %v3400_v20 }
 0x257   :  { %3176 = vmatprep.mubr.msk.f32.mxu1 %vm228_vm0, %v4182_v44  ;;  %3427 = vmatpush3.bf16.msra.mxu0 %v3424_v21 }
 0x258   :  { %3209 = vmatprep.mubr.msk.f32.mxu0 %vm228_vm0, %v4182_v44  ;;  %3405 = vmatprep.subr.bf16.mxu1 %v3404_v26 }
 0x259   :  { %3429 = vmatprep.subr.bf16.mxu0 %v3428_v29 }
 0x25a   :  { %3407 = vmatpush3.bf16.msra.mxu1 %v3404_v26 }
 0x25b   :  { %3431 = vmatpush3.bf16.msra.mxu0 %v3428_v29  ;;  %3417 = vmatprep.subr.bf16.mxu1 %v3416_v30 }
 0x25c   :  { %3223 = vmatprep.subr.mxu0 %v3901_v40 }
 0x25d   :  { %3177 = vmatmul.mubr.msk.f32.vlgmr.msra.gmra.mrb[8].mxu1 %vm228_vm0, %v4188_v51 }
 0x25e   :  { %3210 = vmatmul.mubr.msk.f32.vlgmr.msra.gmra.mrb[8].mxu0 %vm228_vm0, %v4188_v51  ;;  %3419 = vmatpush3.bf16.msra.mxu1 %v3416_v30 }
 0x25f   :  { %3198 = vmatprep.mubr.msk.f32.mxu1 %vm228_vm0, %v4182_v44  ;;  %3421 = vmatprep.subr.bf16.mxu1 %v3420_v33 }
 0x260   :  { %3225 = vmatprep.mubr.msk.f32.mxu0 %vm3902_vm1, %v3901_v40 }
 0x262   :  { %3423 = vmatpush3.bf16.msra.mxu1 %v3420_v33 }
 0x263   :  { %3433 = vmatprep.subr.bf16.mxu1 %v3432_v36 }
 0x265   :  { %3199 = vmatmul.mubr.msk.f32.vlgmr.msra.gmra.mrb[10].mxu1 %vm228_vm0, %v4188_v51 }
 0x266   :  { %3435 = vmatpush3.bf16.msra.mxu1 %v3432_v36  ;;  %3220 = vmatprep.mubr.msk.f32.mxu1 %vm228_vm0, %v4182_v44 }
 0x267   :  { %3437 = vmatprep.subr.bf16.mxu1 %v3436_v39 }
 0x26a   :  { %3439 = vmatpush3.bf16.msra.mxu1 %v3436_v39 }
 0x26b   :  { %3228 = vmatprep.subr.mxu1 %v3901_v40 }
 0x26d   :  { %3221 = vmatmul.mubr.msk.f32.vlgmr.msra.gmra.mrb[12].mxu1 %vm228_vm0, %v4188_v51 }
 0x26e   :  { %3230 = vmatprep.mubr.msk.f32.mxu1 %vm3902_vm1, %v3901_v40 }
 0x310   :  { %v3101_v41 = vpop.f32.mrb[0].mxu1  ;;  %v3123_v42 = vpop.f32.mrb[0].mxu0 }
 0x311   :  { %v360_v43 = vpop.f32.mrb[1].mxu1  ;;  %v510_v44 = vpop.f32.mrb[1].mxu0 }
 0x318   :  { %v3112_v45 = vpop.f32.mrb[2].mxu1  ;;  %v3145_v46 = vpop.f32.mrb[2].mxu0 }
 0x319   :  { %v435_v47 = vpop.f32.mrb[3].mxu1  ;;  %v676_v48 = vpop.f32.mrb[3].mxu0  ;;  %3229 = vmatpush3.xpose.msk.msra.mxu1 %vm1226_vm2, %v3145_v46 }
 0x31a   :  { %3224 = vmatpush3.xpose.msk.msra.mxu0 %vm1226_vm2, %v676_v48  ;;  %3238 = vmatprep.subr.mxu1 %v3901_v40 }
 0x31b   :  { %3233 = vmatprep.subr.mxu0 %v3901_v40 }
 0x31c   :  { %3231 = vmatmul.mubr.msk.f32.vlgmr.msra.gmra.mrb[14].mxu1 %vm1226_vm2, %v3101_v41 }
 0x31d   :  { %3226 = vmatmul.mubr.msk.f32.vlgmr.msra.gmra.mrb[10].mxu0 %vm1226_vm2, %v360_v43  ;;  %3240 = vmatprep.mubr.msk.f32.mxu1 %vm3902_vm1, %v3901_v40 }
 0x31e   :  { %3235 = vmatprep.mubr.msk.f32.mxu0 %vm3902_vm1, %v3901_v40 }
 0x320   :  { %v3134_v49 = vpop.f32.mrb[4].mxu1 }
 0x321   :  { %v3167_v50 = vpop.f32.mrb[4].mxu0  ;;  %v585_v51 = vpop.f32.mrb[5].mxu1 }
 0x322   :  { %v826_v52 = vpop.f32.mrb[5].mxu0 }
 0x328   :  { %v3156_v53 = vpop.f32.mrb[6].mxu1 }
 0x329   :  { %v3189_v54 = vpop.f32.mrb[6].mxu0  ;;  %v751_v55 = vpop.f32.mrb[7].mxu1  ;;  %3239 = vmatpush3.xpose.msk.msra.mxu1 %vm1226_vm2, %v3156_v53 }
 0x32a   :  { %v992_v56 = vpop.f32.mrb[7].mxu0  ;;  %3234 = vmatpush3.xpose.msk.msra.mxu0 %vm1226_vm2, %v751_v55  ;;  %3248 = vmatprep.subr.mxu1 %v3901_v40 }
 0x32b   :  { %3243 = vmatprep.subr.mxu0 %v3901_v40 }
 0x32c   :  { %3241 = vmatmul.mubr.msk.f32.vlgmr.msra.gmra.mrb[16].mxu1 %vm1226_vm2, %v3112_v45 }
 0x32d   :  { %3236 = vmatmul.mubr.msk.f32.vlgmr.msra.gmra.mrb[12].mxu0 %vm1226_vm2, %v435_v47  ;;  %3249 = vmatpush3.xpose.msk.msra.mxu1 %vm1226_vm2, %v3167_v50 }
 0x32e   :  { %3244 = vmatpush3.xpose.msk.msra.mxu0 %vm1226_vm2, %v826_v52  ;;  %3250 = vmatprep.mubr.msk.f32.mxu1 %vm3902_vm1, %v3901_v40 }
 0x32f   :  { %3245 = vmatprep.mubr.msk.f32.mxu0 %vm3902_vm1, %v3901_v40  ;;  %3258 = vmatprep.subr.mxu1 %v3901_v40 }
 0x330   :  { %v3178_v57 = vpop.f32.mrb[8].mxu1  ;;  %3251 = vmatmul.mubr.msk.f32.vlgmr.msra.gmra.mrb[18].mxu1 %vm1226_vm2, %v3123_v42  ;;  %3253 = vmatprep.subr.mxu0 %v3901_v40 }
 0x331   :  { %v4265_v58 = vpop.f32.mrb[8].mxu0  ;;  %v901_v59 = vpop.f32.mrb[9].mxu1  ;;  %3246 = vmatmul.mubr.msk.f32.vlgmr.msra.gmra.mrb[14].mxu0 %vm1226_vm2, %v510_v44  ;;  %3259 = vmatpush3.xpose.msk.msra.mxu1 %vm1226_vm2, %v3178_v57 }
 0x332   :  { %v4269_v60 = vpop.f32.mrb[9].mxu0  ;;  %3254 = vmatpush3.xpose.msk.msra.mxu0 %vm1226_vm2, %v901_v59  ;;  %3260 = vmatprep.mubr.msk.f32.mxu1 %vm3902_vm1, %v3901_v40 }
 0x333   :  { %3255 = vmatprep.mubr.msk.f32.mxu0 %vm3902_vm1, %v3901_v40  ;;  %3268 = vmatprep.subr.mxu1 %v3901_v40 }
 0x334   :  { %3261 = vmatmul.mubr.msk.f32.vlgmr.msra.gmra.mrb[20].mxu1 %vm1226_vm2, %v3134_v49  ;;  %3263 = vmatprep.subr.mxu0 %v3901_v40 }
 0x335   :  { %3256 = vmatmul.mubr.msk.f32.vlgmr.msra.gmra.mrb[16].mxu0 %vm1226_vm2, %v585_v51  ;;  %3269 = vmatpush3.msra.mxu1 %v3189_v54 }
 0x336   :  { %3264 = vmatpush3.msra.mxu0 %v992_v56  ;;  %3270 = vmatprep.mubr.msk.f32.mxu1 %vm3902_vm1, %v3901_v40 }
 0x337   :  { %3278 = vmatprep.subr.mxu1 %v3901_v40  ;;  %3265 = vmatprep.mubr.msk.f32.mxu0 %vm3902_vm1, %v3901_v40 }
 0x338   :  { %v4285_v61 = vpop.f32.mrb[10].mxu1  ;;  %3273 = vmatprep.subr.mxu0 %v3901_v40 }
 0x339   :  { %v4288_v62 = vpop.f32.mrb[11].mxu1 }
 0x340   :  { %v4290_v63 = vpop.f32.mrb[12].mxu1 }
 0x341   :  { %v4292_v2 = vpop.f32.mrb[13].mxu1 }
 0x3ef   :  { %v1375_v3 = vpop.f32.mrb[14].mxu1 }
 0x3f0   :  { %v1299_v4 = vpop.f32.mrb[10].mxu0  ;;  %v3232_v5 = vpop.f32.mrb[15].mxu1  ;;  %v1838_v6 = vsel %vm1226_vm2, %v1375_v3, -inf }
 0x3f1   :  { %v3227_v7 = vpop.f32.mrb[11].mxu0  ;;  %1839 = vmax.xlane.f32.xlu1 %v1838_v6  ;;  %v1835_v8 = vsel %vm1226_vm2, %v1299_v4, -inf }
 0x3f2   :  { %1836 = vmax.xlane.f32.xlu0 %v1835_v8 }
 0x3ff   :  { %v1527_v9 = vpop.f32.mrb[16].mxu1 }
 0x400   :  { %v1451_v10 = vpop.f32.mrb[12].mxu0  ;;  %v3242_v11 = vpop.f32.mrb[17].mxu1  ;;  %v1844_v12 = vsel %vm1226_vm2, %v1527_v9, -inf }
 0x401   :  { %v3237_v13 = vpop.f32.mrb[13].mxu0  ;;  %1845 = vmax.xlane.f32.xlu1 %v1844_v12  ;;  %v1841_v14 = vsel %vm1226_vm2, %v1451_v10, -inf }
 0x402   :  { %1842 = vmax.xlane.f32.xlu0 %v1841_v14 }
 0x403   :  { %v1679_v15 = vpop.f32.mrb[18].mxu1 }
 0x404   :  { %v1603_v16 = vpop.f32.mrb[14].mxu0  ;;  %v3252_v17 = vpop.f32.mrb[19].mxu1  ;;  %v1850_v18 = vsel %vm1226_vm2, %v1679_v15, -inf }
 0x405   :  { %v3247_v19 = vpop.f32.mrb[15].mxu0  ;;  %1851 = vmax.xlane.f32.xlu1 %v1850_v18  ;;  %v1847_v20 = vsel %vm1226_vm2, %v1603_v16, -inf }
 0x406   :  { %1848 = vmax.xlane.f32.xlu0 %v1847_v20 }
 0x407   :  { %v1831_v21 = vpop.f32.mrb[20].mxu1 }
 0x408   :  { %v1755_v22 = vpop.f32.mrb[16].mxu0  ;;  %v3262_v23 = vpop.f32.mrb[21].mxu1  ;;  %v1856_v24 = vsel %vm1226_vm2, %v1831_v21, -inf }
 0x409   :  { %v3257_v25 = vpop.f32.mrb[17].mxu0  ;;  %1857 = vmax.xlane.f32.xlu1 %v1856_v24  ;;  %v1853_v26 = vsel %vm1226_vm2, %v1755_v22, -inf }
 0x40a   :  { %1854 = vmax.xlane.f32.xlu0 %v1853_v26 }
 0x47e   :  { %v1840_v27 = vpop.xlane.xlu1 %1839 }
 0x47f   :  { %v1860_v28 = vsub.f32 %v1375_v3, %v1840_v27  ;;  %v1837_v29 = vpop.xlane.xlu0 %1836 }
 0x480   :  { %v1859_v30 = vsub.f32 %v1299_v4, %v1837_v29 }
 0x481   :  { %v1869_v31 = vmul.f32 1.442695, %v1860_v28 }
 0x482   :  { %v1867_v32 = vmul.f32 1.442695, %v1859_v30 }
 0x483   :  { %3497 = vpow2.f32 %v1869_v31 }
 0x484   :  { %3499 = vpow2.f32 %v1867_v32 }
 0x48d   :  { %v3498_v33 = vpop.eup %3497 }
 0x48e   :  { %v3500_v34 = vpop.eup %3499  ;;  %v1846_v35 = vpop.xlane.xlu1 %1845  ;;  %v1886_v36 = vsel %vm1226_vm2, %v3498_v33, 0.0 }
 0x48f   :  { %v1862_v37 = vsub.f32 %v1527_v9, %v1846_v35  ;;  %v1843_v38 = vpop.xlane.xlu0 %1842  ;;  %1887 = vadd.xlane.f32.xlu1 %v1886_v36  ;;  %v1883_v39 = vsel %vm1226_vm2, %v3500_v34, 0.0  ;;  %v2539_v35 = vld [vmem:[#allocation13] sm:$0xff]  ;;  %v2540_v36 = vld [vmem:[#allocation13 + $0x8] sm:$0xff] }
 0x490   :  { %v1861_v41 = vsub.f32 %v1451_v10, %v1843_v38  ;;  %1884 = vadd.xlane.f32.xlu0 %v1883_v39  ;;  %v2542_v38 = vld [vmem:[#allocation13 + $0x18] sm:$0xff] }
 0x491   :  { %v1873_v42 = vmul.f32 1.442695, %v1862_v37  ;;  %v3440_v37 = vpack.c.bf16 %v2540_v36, %v2539_v35  ;;  %v2958_v35 = vld [vmem:[#allocation17] ss:$0 sm:$0xff] }
 0x492   :  { %v1871_v43 = vmul.f32 1.442695, %v1861_v41  ;;  %v1852_v44 = vpop.xlane.xlu1 %1851 }
 0x493   :  { %3501 = vpow2.f32 %v1873_v42  ;;  %v1864_v45 = vsub.f32 %v1679_v15, %v1852_v44  ;;  %v1849_v46 = vpop.xlane.xlu0 %1848 }
 0x494   :  { %3503 = vpow2.f32 %v1871_v43  ;;  %v1863_v47 = vsub.f32 %v1603_v16, %v1849_v46 }
 0x495   :  { %v1877_v48 = vmul.f32 1.442695, %v1864_v45 }
 0x496   :  { %v1875_v49 = vmul.f32 1.442695, %v1863_v47  ;;  %v1858_v50 = vpop.xlane.xlu1 %1857 }
 0x497   :  { %3505 = vpow2.f32 %v1877_v48  ;;  %v1866_v51 = vsub.f32 %v1831_v21, %v1858_v50  ;;  %v1855_v52 = vpop.xlane.xlu0 %1854 }
 0x498   :  { %3507 = vpow2.f32 %v1875_v49  ;;  %v1865_v53 = vsub.f32 %v1755_v22, %v1855_v52 }
 0x499   :  { %v1881_v54 = vmul.f32 1.442695, %v1866_v51 }
 0x49a   :  { %v1879_v55 = vmul.f32 1.442695, %v1865_v53 }
 0x49b   :  { %3509 = vpow2.f32 %v1881_v54 }
 0x49c   :  { %3511 = vpow2.f32 %v1879_v55 }
 0x49d   :  { %v3502_v56 = vpop.eup %3501 }
 0x49e   :  { %v3504_v57 = vpop.eup %3503  ;;  %v1892_v59 = vsel %vm1226_vm2, %v3502_v56, 0.0 }
 0x49f   :  { %1893 = vadd.xlane.f32.xlu1 %v1892_v59  ;;  %v1889_v3 = vsel %vm1226_vm2, %v3504_v57, 0.0 }
 0x4a0   :  { %1890 = vadd.xlane.f32.xlu0 %v1889_v3 }
 0x4a1   :  { %v3506_v4 = vpop.eup %3505 }
 0x4a2   :  { %v3508_v5 = vpop.eup %3507  ;;  %v1898_v6 = vsel %vm1226_vm2, %v3506_v4, 0.0 }
 0x4a3   :  { %1899 = vadd.xlane.f32.xlu1 %v1898_v6  ;;  %v1895_v7 = vsel %vm1226_vm2, %v3508_v5, 0.0 }
 0x4a4   :  { %1896 = vadd.xlane.f32.xlu0 %v1895_v7 }
 0x4a5   :  { %v3510_v8 = vpop.eup %3509 }
 0x4a6   :  { %v3512_v9 = vpop.eup %3511  ;;  %v1904_v10 = vsel %vm1226_vm2, %v3510_v8, 0.0 }
 0x4a7   :  { %1905 = vadd.xlane.f32.xlu1 %v1904_v10  ;;  %v1901_v11 = vsel %vm1226_vm2, %v3512_v9, 0.0 }
 0x4a8   :  { %1902 = vadd.xlane.f32.xlu0 %v1901_v11 }
 0x51c   :  { %v1888_v12 = vpop.xlane.xlu1 %1887 }
 0x51d   :  { %3513 = vrcp.f32 %v1888_v12  ;;  %v1885_v13 = vpop.xlane.xlu0 %1884 }
 0x51e   :  { %3515 = vrcp.f32 %v1885_v13 }
 0x527   :  { %v3514_v14 = vpop.eup %3513 }
 0x528   :  { %v3516_v15 = vpop.eup %3515  ;;  %v1916_v16 = vmul.f32 %v3514_v14, %v3498_v33 }
 0x529   :  { %v1915_v17 = vmul.f32 %v3516_v15, %v3500_v34 }
 0x52a   :  { %3271 = vmatmul.mubr.msk.f32.vlgmr.msra.gmra.mrb[22].mxu1 %vm1226_vm2, %v1916_v16 }
 0x52b   :  { %3279 = vmatpush3.msra.mxu1 %v4285_v61  ;;  %3266 = vmatmul.mubr.msk.f32.vlgmr.msra.gmra.mrb[18].mxu0 %vm1226_vm2, %v1915_v17 }
 0x52c   :  { %3274 = vmatpush3.msra.mxu0 %v4288_v62  ;;  %v1894_v18 = vpop.xlane.xlu1 %1893  ;;  %3280 = vmatprep.mubr.msk.f32.mxu1 %vm3902_vm1, %v3901_v40 }
 0x52d   :  { %3517 = vrcp.f32 %v1894_v18  ;;  %v1891_v19 = vpop.xlane.xlu0 %1890  ;;  %3288 = vmatprep.subr.mxu1 %v3901_v40  ;;  %3275 = vmatprep.mubr.msk.f32.mxu0 %vm3902_vm1, %v3901_v40 }
 0x52e   :  { %3519 = vrcp.f32 %v1891_v19  ;;  %3283 = vmatprep.subr.mxu0 %v3901_v40 }
 0x530   :  { %v1900_v20 = vpop.xlane.xlu1 %1899 }
 0x531   :  { %3521 = vrcp.f32 %v1900_v20  ;;  %v1897_v61 = vpop.xlane.xlu0 %1896 }
 0x532   :  { %3523 = vrcp.f32 %v1897_v61 }
 0x534   :  { %v1906_v21 = vpop.xlane.xlu1 %1905 }
 0x535   :  { %3525 = vrcp.f32 %v1906_v21  ;;  %v1903_v62 = vpop.xlane.xlu0 %1902 }
 0x536   :  { %3527 = vrcp.f32 %v1903_v62 }
 0x537   :  { %v3518_v22 = vpop.eup %3517 }
 0x538   :  { %v3520_v23 = vpop.eup %3519  ;;  %v1918_v24 = vmul.f32 %v3518_v22, %v3502_v56 }
 0x539   :  { %v1917_v25 = vmul.f32 %v3520_v23, %v3504_v57  ;;  %v2677_v23 = vld [vmem:[#allocation19] sm:$0xff] }
 0x53a   :  { %3281 = vmatmul.mubr.msk.f32.vlgmr.msra.gmra.mrb[24].mxu1 %vm1226_vm2, %v1918_v24  ;;  %v2678_v24 = vld [vmem:[#allocation19 + $0x8] sm:$0xff] }
 0x53b   :  { %v3522_v26 = vpop.eup %3521  ;;  %3289 = vmatpush3.msra.mxu1 %v4265_v58  ;;  %3276 = vmatmul.mubr.msk.f32.vlgmr.msra.gmra.mrb[20].mxu0 %vm1226_vm2, %v1917_v25  ;;  %v3448_v25 = vpack.c.bf16 %v2678_v24, %v2677_v23 }
 0x53c   :  { %v3524_v27 = vpop.eup %3523  ;;  %v1920_v28 = vmul.f32 %v3522_v26, %v3506_v4  ;;  %3284 = vmatpush3.msra.mxu0 %v4269_v60  ;;  %3290 = vmatprep.mubr.msk.f32.mxu1 %vm3902_vm1, %v3901_v40  ;;  %v2679_v26 = vld [vmem:[#allocation19 + $0x10] sm:$0xff] }
 0x53d   :  { %v1919_v29 = vmul.f32 %v3524_v27, %v3508_v5  ;;  %3298 = vmatprep.subr.mxu1 %v3901_v40  ;;  %3285 = vmatprep.mubr.msk.f32.mxu0 %vm3902_vm1, %v3901_v40  ;;  %v2680_v27 = vld [vmem:[#allocation19 + $0x18] sm:$0xff] }
 0x53e   :  { %3291 = vmatmul.mubr.msk.f32.vlgmr.msra.gmra.mrb[26].mxu1 %vm1226_vm2, %v1920_v28  ;;  %3293 = vmatprep.subr.mxu0 %v3901_v40  ;;  %v3452_v28 = vpack.c.bf16 %v2680_v27, %v2679_v26 }
 0x53f   :  { %v3526_v58 = vpop.eup %3525  ;;  %3299 = vmatpush3.msra.mxu1 %v4290_v63  ;;  %3286 = vmatmul.mubr.msk.f32.vlgmr.msra.gmra.mrb[22].mxu0 %vm1226_vm2, %v1919_v29 }
 0x540   :  { %v3528_v30 = vpop.eup %3527  ;;  %v1922_v60 = vmul.f32 %v3526_v58, %v3510_v8  ;;  %3294 = vmatpush3.msra.mxu0 %v4292_v2  ;;  %3300 = vmatprep.mubr.msk.f32.mxu1 %vm3902_vm1, %v3901_v40  ;;  %v2541_v2 = vld [vmem:[#allocation13 + $0x10] sm:$0xff]  ;;  %v2954_v8 = vld [vmem:[#allocation14] ss:$0 sm:$0xff] }
 0x541   :  { %v1921_v31 = vmul.f32 %v3528_v30, %v3512_v9  ;;  %3295 = vmatprep.mubr.msk.f32.mxu0 %vm3902_vm1, %v3901_v40  ;;  %3441 = vmatprep.subr.bf16.mxu0 %v3440_v37  ;;  %v3444_v39 = vpack.c.bf16 %v2542_v38, %v2541_v2 }
 0x542   :  { %3301 = vmatmul.mubr.msk.f32.vlgmr.msra.gmra.mrb[28].mxu1 %vm1226_vm2, %v1922_v60  ;;  %3449 = vmatprep.subr.bf16.mxu1 %v3448_v25 }
 0x543   :  { %3296 = vmatmul.mubr.msk.f32.vlgmr.msra.gmra.mrb[24].mxu0 %vm1226_vm2, %v1921_v31  ;;  %3451 = vmatpush3.bf16.msra.mxu1 %v3448_v25 }
 0x544   :  { %3443 = vmatpush3.bf16.msra.mxu0 %v3440_v37  ;;  %3453 = vmatprep.subr.bf16.mxu1 %v3452_v28 }
 0x545   :  { %3445 = vmatprep.subr.bf16.mxu0 %v3444_v39 }
 0x547   :  { %3455 = vmatpush3.bf16.msra.mxu1 %v3452_v28 }
 0x548   :  { %3447 = vmatpush3.bf16.msra.mxu0 %v3444_v39 }
 0x5fd   :  { %v2065_v32 = vpop.f32.mrb[22].mxu1 }
 0x5fe   :  { %v1992_v33 = vpop.f32.mrb[18].mxu0  ;;  %v3272_v63 = vpop.f32.mrb[23].mxu1 }
 0x5ff   :  { %v3267_v34 = vpop.f32.mrb[19].mxu0  ;;  %v2957_v63 = vld [vmem:[#allocation16] ss:$0 sm:$0xff] }
 0x60d   :  { %v2211_v41 = vpop.f32.mrb[24].mxu1 }
 0x60e   :  { %v2138_v40 = vpop.f32.mrb[20].mxu0  ;;  %2511 = vrot.lane.b32.xlu1 %v2211_v41, %s3889_s22  ;;  %v3282_v42 = vpop.f32.mrb[25].mxu1 }
 0x60f   :  { %2509 = vrot.lane.b32.xlu0 %v2138_v40, %s3889_s22  ;;  %v3277_v43 = vpop.f32.mrb[21].mxu0  ;;  %v2779_v40 = vld [vmem:[#allocation22] sm:$0xff]  ;;  %v2780_v42 = vld [vmem:[#allocation22 + $0x8] sm:$0xff] }
 0x610   :  { %v3456_v43 = vpack.c.bf16 %v2780_v42, %v2779_v40 }
 0x611   :  { %v2357_v44 = vpop.f32.mrb[26].mxu1 }
 0x612   :  { %v2284_v45 = vpop.f32.mrb[22].mxu0  ;;  %2519 = vrot.lane.b32.xlu1 %v2357_v44, %s3903_s13  ;;  %v3292_v46 = vpop.f32.mrb[27].mxu1  ;;  %3457 = vmatprep.subr.bf16.mxu0 %v3456_v43  ;;  %v2781_v44 = vld [vmem:[#allocation22 + $0x10] sm:$0xff] }
 0x613   :  { %v3287_v47 = vpop.f32.mrb[23].mxu0 }
 0x614   :  { %v2783_v47 = vld [vmem:[#allocation22 + $0x20] sm:$0xff] }
 0x615   :  { %v2503_v48 = vpop.f32.mrb[28].mxu1 }
 0x616   :  { %v2430_v49 = vpop.f32.mrb[24].mxu0  ;;  %2517 = vrot.lane.b32.xlu1 %v2284_v45, %s3903_s13  ;;  %v3302_v50 = vpop.f32.mrb[29].mxu1  ;;  %v2782_v45 = vld [vmem:[#allocation22 + $0x18] sm:$0xff] }
 0x617   :  { %2525 = vrot.lane.b32.xlu0 %v2430_v49, %s3904_s1  ;;  %v3297_v51 = vpop.f32.mrb[25].mxu0  ;;  %v3460_v46 = vpack.c.bf16 %v2782_v45, %v2781_v44  ;;  %v2785_v50 = vld [vmem:[#allocation22 + $0x30] sm:$0xff] }
 0x618   :  { %v2786_v51 = vld [vmem:[#allocation22 + $0x38] sm:$0xff] }
 0x61a   :  { %2527 = vrot.lane.b32.xlu1 %v2503_v48, %s3904_s1  ;;  %v2784_v48 = vld [vmem:[#allocation22 + $0x28] sm:$0xff] }
 0x61b   :  { %v3464_v49 = vpack.c.bf16 %v2784_v48, %v2783_v47 }
 0x680   :  { %v2512_v52 = vpop.permute.xlu1 %2511 }
 0x681   :  { %v2510_v54 = vpop.permute.xlu0 %2509  ;;  %v2532_v4 = vsel %vm1226_vm2, %v2065_v32, %v2512_v52  ;;  %v3468_v52 = vpack.c.bf16 %v2786_v51, %v2785_v50 }
 0x682   :  { %v2531_v55 = vsel %vm1226_vm2, %v1992_v33, %v2510_v54 }
 0x684   :  { %v2520_v53 = vpop.permute.xlu1 %2519 }
 0x685   :  { %v2535_v5 = vsel %vm2533_vm4, %v2532_v4, %v2520_v53  ;;  %v2959_v53 = vld [vmem:[#allocation20] ss:$0 sm:$0xff] }
 0x688   :  { %v2518_v56 = vpop.permute.xlu1 %2517 }
 0x689   :  { %v2534_v57 = vsel %vm2533_vm4, %v2531_v55, %v2518_v56  ;;  %v2526_v59 = vpop.permute.xlu0 %2525 }
 0x68a   :  { %v2537_v3 = vsel %vm2536_vm3, %v2534_v57, %v2526_v59 }
 0x68b   :  { %3311 = vmatprep.mubr.msk.f32.mxu0 %vm228_vm0, %v2537_v3 }
 0x68c   :  { %v2528_v6 = vpop.permute.xlu1 %2527 }
 0x68d   :  { %v2538_v7 = vsel %vm2536_vm3, %v2535_v5, %v2528_v6 }
 0x68e   :  { %3312 = vmatmul.mubr.msk.f32.vlgmr.msra.gmra.mrb[26].mxu0 %vm228_vm0, %v2538_v7 }
 0x68f   :  { %3459 = vmatpush3.bf16.msra.mxu0 %v3456_v43 }
 0x690   :  { %3461 = vmatprep.subr.bf16.mxu0 %v3460_v46 }
 0x693   :  { %3463 = vmatpush3.bf16.msra.mxu0 %v3460_v46 }
 0x694   :  { %3465 = vmatprep.subr.bf16.mxu0 %v3464_v49 }
 0x697   :  { %3467 = vmatpush3.bf16.msra.mxu0 %v3464_v49 }
 0x698   :  { %3469 = vmatprep.subr.bf16.mxu0 %v3468_v52 }
 0x69b   :  { %3471 = vmatpush3.bf16.msra.mxu0 %v3468_v52 }
 0x761   :  { %v3313_v9 = vpop.f32.mrb[26].mxu0 }
 0x762   :  { %v2628_v10 = vadd.f32 %v3313_v9, %v2954_v8  ;;  %v2622_v11 = vpop.f32.mrb[27].mxu0 }
 0x763   :  { %v2623_v12 = vadd.f32 %v2954_v8, %v2622_v11 }
 0x764   :  { %v4347_v13 = vadd.f32 %v2628_v10, %v4172_v1 }
 0x765   :  { %v4350_v14 = vadd.f32 %v2623_v12, %v4170_v0  ;;  %v2962_v12 = vld [vmem:[#allocation23] ss:$0 sm:$0xff] }
 0x766   :  { %v2638_v15 = vsel %vm228_vm0, %v4347_v13, 0.0 }
 0x767   :  { %2639 = vadd.xlane.f32.xlu1 %v2638_v15  ;;  %v2635_v16 = vsel %vm228_vm0, %v4350_v14, 0.0 }
 0x768   :  { %2636 = vadd.xlane.f32.xlu0 %v2635_v16 }
 0x7f4   :  { %v2640_v17 = vpop.xlane.xlu1 %2639 }
 0x7f5   :  { %v2642_v18 = vmul.f32 0.03125, %v2640_v17  ;;  %v2637_v19 = vpop.xlane.xlu0 %2636 }
 0x7f6   :  { %v2641_v20 = vmul.f32 0.03125, %v2637_v19 }
 0x7f7   :  { %v2644_v61 = vsub.f32 %v4347_v13, %v2642_v18 }
 0x7f8   :  { %v2643_v1 = vsub.f32 %v4350_v14, %v2641_v20 }
 0x7f9   :  { %v2646_v62 = vmul.f32 %v2644_v61, %v2644_v61 }
 0x7fa   :  { %v2645_v21 = vmul.f32 %v2643_v1, %v2643_v1 }
 0x7fb   :  { %v2650_v22 = vsel %vm228_vm0, %v2646_v62, 0.0 }
 0x7fc   :  { %v2647_v0 = vsel %vm228_vm0, %v2645_v21, 0.0 }
 0x7fd   :  { %2648 = vadd.xlane.f32.xlu0 %v2647_v0 }
 0x801   :  { %2651 = vadd.xlane.f32.xlu0 %v2650_v22 }
 0x88a   :  { %v2649_v29 = vpop.xlane.xlu0 %2648 }
 0x88b   :  { %v2653_v58 = vmul.f32 0.03125, %v2649_v29 }
 0x88d   :  { %v2655_v30 = vadd.f32 1e-05, %v2653_v58 }
 0x88e   :  { %v2652_v60 = vpop.xlane.xlu0 %2651 }
 0x88f   :  { %3529 = vrsqrt.f32 %v2655_v30  ;;  %v2654_v31 = vmul.f32 0.03125, %v2652_v60 }
 0x891   :  { %v2656_v32 = vadd.f32 1e-05, %v2654_v31 }
 0x893   :  { %3531 = vrsqrt.f32 %v2656_v32 }
 0x899   :  { %v3530_v33 = vpop.eup %3529 }
 0x89a   :  { %v2659_v34 = vmul.f32 %v3530_v33, %v2643_v1 }
 0x89c   :  { %v2667_v36 = vmul.f32 %v2957_v63, %v2659_v34 }
 0x89d   :  { %v3532_v37 = vpop.eup %3531 }
 0x89e   :  { %v2660_v2 = vmul.f32 %v3532_v37, %v2644_v61  ;;  %v2675_v38 = vadd.f32 %v2958_v35, %v2667_v36 }
 0x8a0   :  { %v2668_v39 = vmul.f32 %v2957_v63, %v2660_v2  ;;  %3322 = vmatprep.mubr.msk.f32.mxu1 %vm228_vm0, %v2675_v38 }
 0x8a2   :  { %v2676_v41 = vadd.f32 %v2958_v35, %v2668_v39 }
 0x8a4   :  { %3323 = vmatmul.mubr.msk.f32.vlgmr.msra.gmra.mrb[30].mxu1 %vm228_vm0, %v2676_v41 }
 0x977   :  { %v3324_v54 = vpop.f32.mrb[30].mxu1 }
 0x978   :  { %v2766_v55 = vadd.f32 %v3324_v54, %v2959_v53  ;;  %v2760_v56 = vpop.f32.mrb[31].mxu1 }
 0x979   :  { %v2761_v57 = vadd.f32 %v2959_v53, %v2760_v56 }
 0x97a   :  { %v2772_v59 = vmul.f32 0.70710677, %v2766_v55  ;;  %v2770_v9 = vmul.f32 0.5, %v2766_v55 }
 0x97b   :  { %v2771_v3 = vmul.f32 0.70710677, %v2761_v57  ;;  %v2769_v7 = vmul.f32 0.5, %v2761_v57 }
 0x97c   :  { %3533 = verf.f32 %v2772_v59 }
 0x97d   :  { %3535 = verf.f32 %v2771_v3 }
 0x986   :  { %v3534_v4 = vpop.eup %3533 }
 0x987   :  { %v3536_v5 = vpop.eup %3535  ;;  %v2776_v6 = vadd.f32 1.0, %v3534_v4 }
 0x988   :  { %v2775_v8 = vadd.f32 1.0, %v3536_v5 }
 0x989   :  { %v2778_v11 = vmul.f32 %v2776_v6, %v2770_v9 }
 0x98a   :  { %v2777_v10 = vmul.f32 %v2775_v8, %v2769_v7 }
 0x98c   :  { %3341 = vmatprep.mubr.msk.f32.mxu0 %vm2794_vm5, %v2777_v10 }
 0x98d   :  { %3342 = vmatmul.mubr.msk.f32.vlgmr.msra.gmra.mrb[28].mxu0 %vm2794_vm5, %v2778_v11 }
 0xa60   :  { %v3343_v15 = vpop.f32.mrb[28].mxu0 }
 0xa61   :  { %v2873_v16 = vadd.f32 %v3343_v15, %v2962_v12  ;;  %v2867_v17 = vpop.f32.mrb[29].mxu0 }
 0xa62   :  { %v2868_v18 = vadd.f32 %v2962_v12, %v2867_v17 }
 0xa63   :  { %v2877_v19 = vadd.f32 %v2873_v16, %v4347_v13 }
 0xa64   :  { %v2876_v20 = vadd.f32 %v2868_v18, %v4350_v14 }
 0xa65   :  { %2879 = vst.msk [vmem:[#allocation25 + $0x8] sm:$0xff] %vm228_vm0, %v2877_v19 }
 0xa66   :  { %2878 = vst.msk [vmem:[#allocation25] sm:$0xff] %vm228_vm0, %v2876_v20 }
 0xa67   :  { %3856 = shalt.err (!%p3853_p4)
}
 0xa68   :  { %s3857_s19 = scalar_lea.hbm %s4395_s14, 256 }
 0xa69   :  { %p3858_p5 = scmp.ne.s32.totalorder %s4395_s14, %s3857_s19  ;;  %p3861_p6 = scmp.lt.u32.totalorder %s3857_s19, %s4395_s14 }
 0xa6b   :  { %p3863_p7 = pnand %p3861_p6, %p3858_p5 }
 0xa6d   :  { %3866 = shalt.err (!%p3863_p7)
}
 0xa6e   :  { %2891 = dma.vmem_to_hbm [thread:$0]  %s2886_s25, 256, %s4395_s14, [#allocation4], %s3888_s30, %s3888_s30, %s3889_s22  }
 0xa6f   :  { %3883 = dma.done.wait [#allocation4], 256  }
 0xa70   :  { %3884 = vsyncadd [#allocation4], 4294967040 }
 0xa71   :  { %2895 = vsyncpa [#allocation3], 1 }
 0xa72   :  { %2896 = vsyncpa [#allocation6], 1 }
 0xa73   :  { %2897 = vsyncpa [#allocation9], 1 }
 0xa74   :  { %2898 = vsyncpa [#allocation12], 1 }
 0xa75   :  { %2899 = vsyncpa [#allocation15], 1 }
 0xa76   :  { %2900 = vsyncpa [#allocation18], 1 }
 0xa77   :  { %2901 = vsyncpa [#allocation21], 1 }
 0xa78   :  { %2902 = vsyncpa [#allocation24], 1 }
 0xa79   :  { %2903 = vsyncpa [#allocation4], 1 }

</bundles_post_ra>
